<compile_context>
chip_gen: v5e
topology: v5e:2x2
jax: 0.10.0
libtpu: 0.0.40
codegen_flags: <defaults>
</compile_context>

<pallas_src>
import functools
import math

import jax
import jax.numpy as jnp
from jax.experimental import pallas as pl
from jax.experimental.pallas import tpu as pltpu


def _round_up(n, m):
    return ((n + m - 1) // m) * m


def _encoder_layer_kernel(
    x_ref,                                   # (bb, S, D)  input tile (read at layer 0)
    wq_ref, bq_ref,                          # (1, H, D, dh), (1, H, 1, dh)
    wk_ref, bk_ref,
    wv_ref, bv_ref,
    wo_ref, bo_ref,                          # (1, H, dh, D), (1, 1, D)
    g1_ref, be1_ref,                         # (1, 1, D)  LayerNorm 1 gamma/beta
    w1_ref, bf1_ref,                         # (1, D, F), (1, 1, F)
    w2_ref, bf2_ref,                         # (1, F, D), (1, 1, D)
    g2_ref, be2_ref,                         # (1, 1, D)  LayerNorm 2 gamma/beta
    out_ref,                                 # (bb, S, D)  output tile
    h_ref,                                   # (bb, S, D)  f32 VMEM carry across layers
    *, n_heads, eps):
    layer = pl.program_id(1)

    # Load the input tile into the f32 carry only at the first layer.
    @pl.when(layer == 0)
    def _():
        h_ref[...] = x_ref[...].astype(jnp.float32)

    bb, S, D = h_ref.shape
    dh = D // n_heads
    scale = 1.0 / math.sqrt(dh)

    h2 = h_ref[...].reshape(bb * S, D)                                   # (N, D)

    # ---- multi-head self-attention (per-head weights: no lane slicing) ----
    attn = jnp.zeros((bb * S, D), jnp.float32) + bo_ref[0]               # (N, D)
    for hi in range(n_heads):                                            # static unroll
        q = (jnp.dot(h2, wq_ref[0, hi], preferred_element_type=jnp.float32)
             + bq_ref[0, hi]).reshape(bb, S, dh)
        k = (jnp.dot(h2, wk_ref[0, hi], preferred_element_type=jnp.float32)
             + bk_ref[0, hi]).reshape(bb, S, dh)
        v = (jnp.dot(h2, wv_ref[0, hi], preferred_element_type=jnp.float32)
             + bv_ref[0, hi]).reshape(bb, S, dh)

        s = jnp.einsum('bqd,bkd->bqk', q, k,
                       preferred_element_type=jnp.float32) * scale       # (bb, S, S)
        s = s - jnp.max(s, axis=-1, keepdims=True)
        p = jnp.exp(s)
        p = p * pl.reciprocal(jnp.sum(p, axis=-1, keepdims=True), approx=False)
        c = jnp.einsum('bqk,bkd->bqd', p, v,
                       preferred_element_type=jnp.float32)               # (bb, S, dh)
        attn = attn + jnp.dot(c.reshape(bb * S, dh), wo_ref[0, hi],
                              preferred_element_type=jnp.float32)        # += head out-proj

    def _layer_norm(z, g, b):
        mu = jnp.mean(z, axis=-1, keepdims=True)
        zc = z - mu
        var = jnp.mean(zc * zc, axis=-1, keepdims=True)
        return zc * jax.lax.rsqrt(var + eps) * g + b

    # residual + norm1  (dropout is identity in eval)
    h2 = _layer_norm(h2 + attn, g1_ref[0], be1_ref[0])

    # ---- position-wise feed-forward ----
    ff = jnp.maximum(
        jnp.dot(h2, w1_ref[0], preferred_element_type=jnp.float32) + bf1_ref[0], 0.0)
    ff = jnp.dot(ff, w2_ref[0], preferred_element_type=jnp.float32) + bf2_ref[0]

    # residual + norm2
    h2 = _layer_norm(h2 + ff, g2_ref[0], be2_ref[0])

    h_ref[...] = h2.reshape(bb, S, D)

    # Output tile is resident across the layer axis; store once at the end.
    @pl.when(layer == pl.num_programs(1) - 1)
    def _():
        out_ref[...] = h_ref[...].astype(out_ref.dtype)


def encoder_forward(x, params, *, n_heads, block_b=8, eps=1e-5):
    """Pallas encoder stack. x: (B, S, d_model) f32 -> (B, S, d_model) f32."""
    B, S, D = x.shape
    (wq, bq, wk, bk, wv, bv, wo, bo,
     g1, be1, w1, bf1, w2, bf2, g2, be2) = params
    L, H, _, dh = wq.shape
    F = w1.shape[-1]
    assert H == n_heads and D == n_heads * dh

    # ---- batch tiling: bounded VMEM, pipelined DMA ----
    bb = max(1, min(block_b, B))
    B_pad = _round_up(B, bb)
    if B_pad != B:
        x = jnp.pad(x, ((0, B_pad - B), (0, 0), (0, 0)))
    grid = (B_pad // bb, L)

    kernel = functools.partial(_encoder_layer_kernel, n_heads=n_heads, eps=eps)

    out = pl.pallas_call(
        kernel,
        out_shape=jax.ShapeDtypeStruct((B_pad, S, D), x.dtype),
        grid=grid,
        in_specs=[
            pl.BlockSpec((bb, S, D), lambda i, l: (i, 0, 0)),             # x
            pl.BlockSpec((1, H, D, dh), lambda i, l: (l, 0, 0, 0)),       # wq
            pl.BlockSpec((1, H, 1, dh), lambda i, l: (l, 0, 0, 0)),       # bq
            pl.BlockSpec((1, H, D, dh), lambda i, l: (l, 0, 0, 0)),       # wk
            pl.BlockSpec((1, H, 1, dh), lambda i, l: (l, 0, 0, 0)),       # bk
            pl.BlockSpec((1, H, D, dh), lambda i, l: (l, 0, 0, 0)),       # wv
            pl.BlockSpec((1, H, 1, dh), lambda i, l: (l, 0, 0, 0)),       # bv
            pl.BlockSpec((1, H, dh, D), lambda i, l: (l, 0, 0, 0)),       # wo
            pl.BlockSpec((1, 1, D), lambda i, l: (l, 0, 0)),              # bo
            pl.BlockSpec((1, 1, D), lambda i, l: (l, 0, 0)),              # ln1 gamma
            pl.BlockSpec((1, 1, D), lambda i, l: (l, 0, 0)),              # ln1 beta
            pl.BlockSpec((1, D, F), lambda i, l: (l, 0, 0)),              # ff w1
            pl.BlockSpec((1, 1, F), lambda i, l: (l, 0, 0)),              # ff b1
            pl.BlockSpec((1, F, D), lambda i, l: (l, 0, 0)),              # ff w2
            pl.BlockSpec((1, 1, D), lambda i, l: (l, 0, 0)),              # ff b2
            pl.BlockSpec((1, 1, D), lambda i, l: (l, 0, 0)),              # ln2 gamma
            pl.BlockSpec((1, 1, D), lambda i, l: (l, 0, 0)),              # ln2 beta
        ],
        out_specs=pl.BlockSpec((bb, S, D), lambda i, l: (i, 0, 0)),
        scratch_shapes=[pltpu.VMEM((bb, S, D), jnp.float32)],             # layer carry
        compiler_params=pltpu.CompilerParams(
            dimension_semantics=("parallel", "arbitrary"),
        ),
    )(x, wq, bq, wk, bk, wv, bv, wo, bo, g1, be1, w1, bf1, w2, bf2, g2, be2)
    return out[:B]


def init_params(key, num_layers, d_model, n_heads, d_ff):
    """PyTorch-style uniform(+/- 1/sqrt(fan_in)) Linear init, stacked per layer.

    Q/K/V weights are stored per head as (L, H, d_model, dh) (i.e. the columns of
    the full (d_model, d_model) matrix grouped by head); the out-projection is
    stored as (L, H, dh, d_model) (rows grouped by head).
    """
    L, D, H, F = num_layers, d_model, n_heads, d_ff
    dh = D // H
    ks = jax.random.split(key, 18)

    def u(k, shape, fan_in):
        bound = 1.0 / math.sqrt(fan_in)
        return jax.random.uniform(k, shape, jnp.float32, -bound, bound)

    wq = u(ks[0], (L, H, D, dh), D); bq = u(ks[1], (L, H, 1, dh), D)
    wk = u(ks[2], (L, H, D, dh), D); bk = u(ks[3], (L, H, 1, dh), D)
    wv = u(ks[4], (L, H, D, dh), D); bv = u(ks[5], (L, H, 1, dh), D)
    wo = u(ks[6], (L, H, dh, D), D); bo = u(ks[7], (L, 1, D), D)
    w1 = u(ks[8], (L, D, F), D);     bf1 = u(ks[9], (L, 1, F), D)
    w2 = u(ks[10], (L, F, D), F);    bf2 = u(ks[11], (L, 1, D), F)
    # LayerNorm affine params (randomized here only to exercise the math;
    # PyTorch's default init is ones/zeros — semantics are identical).
    g1 = 1.0 + 0.5 * jax.random.uniform(ks[12], (L, 1, D), jnp.float32, -1, 1)
    be1 = 0.1 * jax.random.uniform(ks[13], (L, 1, D), jnp.float32, -1, 1)
    g2 = 1.0 + 0.5 * jax.random.uniform(ks[14], (L, 1, D), jnp.float32, -1, 1)
    be2 = 0.1 * jax.random.uniform(ks[15], (L, 1, D), jnp.float32, -1, 1)
    return (wq, bq, wk, bk, wv, bv, wo, bo, g1, be1, w1, bf1, w2, bf2, g2, be2)


def encoder_forward_ref(x, params, *, n_heads, eps=1e-5):
    """Pure-JAX reference (canonical full-matrix multi-head attention)."""
    (wq, bq, wk, bk, wv, bv, wo, bo,
     g1, be1, w1, bf1, w2, bf2, g2, be2) = params
    L, H, D, dh = wq.shape
    B, S, _ = x.shape

    def layer_norm(z, g, b):
        mu = jnp.mean(z, -1, keepdims=True)
        var = jnp.mean((z - mu) ** 2, -1, keepdims=True)
        return (z - mu) / jnp.sqrt(var + eps) * g + b

    h = x.astype(jnp.float32)
    for l in range(L):
        Wq = jnp.transpose(wq[l], (1, 0, 2)).reshape(D, D)
        Wk = jnp.transpose(wk[l], (1, 0, 2)).reshape(D, D)
        Wv = jnp.transpose(wv[l], (1, 0, 2)).reshape(D, D)
        Wo = wo[l].reshape(D, D)
        q = (h @ Wq + bq[l].reshape(D)).reshape(B, S, H, dh)
        k = (h @ Wk + bk[l].reshape(D)).reshape(B, S, H, dh)
        v = (h @ Wv + bv[l].reshape(D)).reshape(B, S, H, dh)
        s = jnp.einsum('bqhd,bkhd->bhqk', q, k) / math.sqrt(dh)
        p = jax.nn.softmax(s, axis=-1)
        c = jnp.einsum('bhqk,bkhd->bqhd', p, v).reshape(B, S, D)
        attn = c @ Wo + bo[l].reshape(D)
        h = layer_norm(h + attn, g1[l].reshape(D), be1[l].reshape(D))
        ff = jnp.maximum(h @ w1[l] + bf1[l].reshape(-1), 0.0) @ w2[l] + bf2[l].reshape(-1)
        h = layer_norm(h + ff, g2[l].reshape(D), be2[l].reshape(D))
    return h


if __name__ == "__main__":
    B, seq_len, d_model, n_heads, d_ff, n_layers = 2, 8, 32, 4, 64, 2

    key = jax.random.PRNGKey(0)
    kx, kp = jax.random.split(key)
    x = jax.random.normal(kx, (B, seq_len, d_model), jnp.float32)
    params = init_params(kp, n_layers, d_model, n_heads, d_ff)

    out = jax.block_until_ready(encoder_forward(x, params, n_heads=n_heads))
    ref = jax.block_until_ready(encoder_forward_ref(x, params, n_heads=n_heads))

    assert out.shape == (B, seq_len, d_model), out.shape
    assert jnp.allclose(out, ref, atol=1e-3, rtol=1e-3), float(jnp.max(jnp.abs(out - ref)))

    print("KERNEL_OK")
</pallas_src>

<mosaic_0001>
module attributes {stable_mosaic.version = 11 : i64} {
  func.func @_encoder_layer_kernel(%arg0: i32, %arg1: i32, %arg2: memref<2x8x32xf32, #tpu.memory_space<vmem>>, %arg3: memref<1x4x32x8xf32, #tpu.memory_space<vmem>>, %arg4: memref<1x4x1x8xf32, #tpu.memory_space<vmem>>, %arg5: memref<1x4x32x8xf32, #tpu.memory_space<vmem>>, %arg6: memref<1x4x1x8xf32, #tpu.memory_space<vmem>>, %arg7: memref<1x4x32x8xf32, #tpu.memory_space<vmem>>, %arg8: memref<1x4x1x8xf32, #tpu.memory_space<vmem>>, %arg9: memref<1x4x8x32xf32, #tpu.memory_space<vmem>>, %arg10: memref<1x1x32xf32, #tpu.memory_space<vmem>>, %arg11: memref<1x1x32xf32, #tpu.memory_space<vmem>>, %arg12: memref<1x1x32xf32, #tpu.memory_space<vmem>>, %arg13: memref<1x32x64xf32, #tpu.memory_space<vmem>>, %arg14: memref<1x1x64xf32, #tpu.memory_space<vmem>>, %arg15: memref<1x64x32xf32, #tpu.memory_space<vmem>>, %arg16: memref<1x1x32xf32, #tpu.memory_space<vmem>>, %arg17: memref<1x1x32xf32, #tpu.memory_space<vmem>>, %arg18: memref<1x1x32xf32, #tpu.memory_space<vmem>>, %arg19: memref<2x8x32xf32, #tpu.memory_space<vmem>>, %arg20: memref<2x8x32xf32, #tpu.memory_space<vmem>>) attributes {dimension_semantics = [#tpu.dimension_semantics<parallel>, #tpu.dimension_semantics<arbitrary>], iteration_bounds = array<i64: 1, 2>, scalar_prefetch = 0 : i64, scratch_operands = 1 : i64, tpu.core_type = #tpu.core_type<tc>, window_params = [{transform_indices = @transform_0, window_bounds = array<i64: 2, 8, 32>}, {transform_indices = @transform_1, window_bounds = array<i64: 1, 4, 32, 8>}, {transform_indices = @transform_2, window_bounds = array<i64: 1, 4, 1, 8>}, {transform_indices = @transform_3, window_bounds = array<i64: 1, 4, 32, 8>}, {transform_indices = @transform_4, window_bounds = array<i64: 1, 4, 1, 8>}, {transform_indices = @transform_5, window_bounds = array<i64: 1, 4, 32, 8>}, {transform_indices = @transform_6, window_bounds = array<i64: 1, 4, 1, 8>}, {transform_indices = @transform_7, window_bounds = array<i64: 1, 4, 8, 32>}, {transform_indices = @transform_8, window_bounds = array<i64: 1, 1, 32>}, {transform_indices = @transform_9, window_bounds = array<i64: 1, 1, 32>}, {transform_indices = @transform_10, window_bounds = array<i64: 1, 1, 32>}, {transform_indices = @transform_11, window_bounds = array<i64: 1, 32, 64>}, {transform_indices = @transform_12, window_bounds = array<i64: 1, 1, 64>}, {transform_indices = @transform_13, window_bounds = array<i64: 1, 64, 32>}, {transform_indices = @transform_14, window_bounds = array<i64: 1, 1, 32>}, {transform_indices = @transform_15, window_bounds = array<i64: 1, 1, 32>}, {transform_indices = @transform_16, window_bounds = array<i64: 1, 1, 32>}, {transform_indices = @transform_17, window_bounds = array<i64: 2, 8, 32>}]} {
    %c0_i32 = arith.constant 0 : i32
    %0 = arith.cmpi eq, %arg1, %c0_i32 : i32
    %1 = arith.extui %0 : i1 to i32
    %c0_i32_0 = arith.constant 0 : i32
    %2 = arith.cmpi ne, %1, %c0_i32_0 : i32
    scf.if %2 {
      %c0_192 = arith.constant 0 : index
      %c0_193 = arith.constant 0 : index
      %c0_194 = arith.constant 0 : index
      %253 = vector.load %arg2[%c0_192, %c0_193, %c0_194] : memref<2x8x32xf32, #tpu.memory_space<vmem>>, vector<2x8x32xf32>
      %c0_195 = arith.constant 0 : index
      %c0_196 = arith.constant 0 : index
      %c0_197 = arith.constant 0 : index
      %254 = vector.load %arg20[%c0_195, %c0_196, %c0_197] : memref<2x8x32xf32, #tpu.memory_space<vmem>>, vector<2x8x32xf32>
      tpu.vector_store %arg20[%c0_195, %c0_196, %c0_197], %253 {strides = array<i32>} : memref<2x8x32xf32, #tpu.memory_space<vmem>>, vector<2x8x32xf32>,
    } else {
    }
    %c0 = arith.constant 0 : index
    %c0_1 = arith.constant 0 : index
    %c0_2 = arith.constant 0 : index
    %3 = vector.load %arg20[%c0, %c0_1, %c0_2] : memref<2x8x32xf32, #tpu.memory_space<vmem>>, vector<2x8x32xf32>
    %4 = vector.shape_cast %3 : vector<2x8x32xf32> to vector<16x32xf32>
    %cst = arith.constant 0.000000e+00 : f32
    %5 = vector.broadcast %cst : f32 to vector<16x32xf32>
    %c0_3 = arith.constant 0 : index
    %c0_4 = arith.constant 0 : index
    %c0_5 = arith.constant 0 : index
    %6 = vector.load %arg10[%c0_3, %c0_4, %c0_5] : memref<1x1x32xf32, #tpu.memory_space<vmem>>, vector<1x1x32xf32>
    %7 = vector.shape_cast %6 : vector<1x1x32xf32> to vector<1x32xf32>
    %8 = vector.broadcast %7 : vector<1x32xf32> to vector<16x32xf32>
    %9 = arith.addf %5, %8 : vector<16x32xf32>
    %c0_6 = arith.constant 0 : index
    %c0_7 = arith.constant 0 : index
    %c0_8 = arith.constant 0 : index
    %c0_9 = arith.constant 0 : index
    %10 = vector.load %arg3[%c0_6, %c0_7, %c0_8, %c0_9] : memref<1x4x32x8xf32, #tpu.memory_space<vmem>>, vector<1x1x32x8xf32>
    %11 = vector.shape_cast %10 : vector<1x1x32x8xf32> to vector<32x8xf32>
    %cst_10 = arith.constant dense<0.000000e+00> : vector<16x8xf32>
    %12 = tpu.matmul %4, %11, %cst_10 {dimension_numbers = #tpu.dot_dimension_numbers<[1], [0], [0], [1], [0, 0, 1, 1], [], []>} : vector<16x32xf32>, vector<32x8xf32>, vector<16x8xf32> -> vector<16x8xf32>
    %c0_11 = arith.constant 0 : index
    %c0_12 = arith.constant 0 : index
    %c0_13 = arith.constant 0 : index
    %c0_14 = arith.constant 0 : index
    %13 = vector.load %arg4[%c0_11, %c0_12, %c0_13, %c0_14] : memref<1x4x1x8xf32, #tpu.memory_space<vmem>>, vector<1x1x1x8xf32>
    %14 = vector.shape_cast %13 : vector<1x1x1x8xf32> to vector<1x8xf32>
    %15 = vector.broadcast %14 : vector<1x8xf32> to vector<16x8xf32>
    %16 = arith.addf %12, %15 : vector<16x8xf32>
    %17 = vector.shape_cast %16 : vector<16x8xf32> to vector<2x8x8xf32>
    %c0_15 = arith.constant 0 : index
    %c0_16 = arith.constant 0 : index
    %c0_17 = arith.constant 0 : index
    %c0_18 = arith.constant 0 : index
    %18 = vector.load %arg5[%c0_15, %c0_16, %c0_17, %c0_18] : memref<1x4x32x8xf32, #tpu.memory_space<vmem>>, vector<1x1x32x8xf32>
    %19 = vector.shape_cast %18 : vector<1x1x32x8xf32> to vector<32x8xf32>
    %cst_19 = arith.constant dense<0.000000e+00> : vector<16x8xf32>
    %20 = tpu.matmul %4, %19, %cst_19 {dimension_numbers = #tpu.dot_dimension_numbers<[1], [0], [0], [1], [0, 0, 1, 1], [], []>} : vector<16x32xf32>, vector<32x8xf32>, vector<16x8xf32> -> vector<16x8xf32>
    %c0_20 = arith.constant 0 : index
    %c0_21 = arith.constant 0 : index
    %c0_22 = arith.constant 0 : index
    %c0_23 = arith.constant 0 : index
    %21 = vector.load %arg6[%c0_20, %c0_21, %c0_22, %c0_23] : memref<1x4x1x8xf32, #tpu.memory_space<vmem>>, vector<1x1x1x8xf32>
    %22 = vector.shape_cast %21 : vector<1x1x1x8xf32> to vector<1x8xf32>
    %23 = vector.broadcast %22 : vector<1x8xf32> to vector<16x8xf32>
    %24 = arith.addf %20, %23 : vector<16x8xf32>
    %25 = vector.shape_cast %24 : vector<16x8xf32> to vector<2x8x8xf32>
    %c0_24 = arith.constant 0 : index
    %c0_25 = arith.constant 0 : index
    %c0_26 = arith.constant 0 : index
    %c0_27 = arith.constant 0 : index
    %26 = vector.load %arg7[%c0_24, %c0_25, %c0_26, %c0_27] : memref<1x4x32x8xf32, #tpu.memory_space<vmem>>, vector<1x1x32x8xf32>
    %27 = vector.shape_cast %26 : vector<1x1x32x8xf32> to vector<32x8xf32>
    %cst_28 = arith.constant dense<0.000000e+00> : vector<16x8xf32>
    %28 = tpu.matmul %4, %27, %cst_28 {dimension_numbers = #tpu.dot_dimension_numbers<[1], [0], [0], [1], [0, 0, 1, 1], [], []>} : vector<16x32xf32>, vector<32x8xf32>, vector<16x8xf32> -> vector<16x8xf32>
    %c0_29 = arith.constant 0 : index
    %c0_30 = arith.constant 0 : index
    %c0_31 = arith.constant 0 : index
    %c0_32 = arith.constant 0 : index
    %29 = vector.load %arg8[%c0_29, %c0_30, %c0_31, %c0_32] : memref<1x4x1x8xf32, #tpu.memory_space<vmem>>, vector<1x1x1x8xf32>
    %30 = vector.shape_cast %29 : vector<1x1x1x8xf32> to vector<1x8xf32>
    %31 = vector.broadcast %30 : vector<1x8xf32> to vector<16x8xf32>
    %32 = arith.addf %28, %31 : vector<16x8xf32>
    %33 = vector.shape_cast %32 : vector<16x8xf32> to vector<2x8x8xf32>
    "tpu.trace_start"() <{level = 10 : i32, message = "bqd,bkd->bqk"}> : () -> ()
    %cst_33 = arith.constant dense<0.000000e+00> : vector<2x8x8xf32>
    %34 = tpu.matmul %17, %25, %cst_33 {dimension_numbers = #tpu.dot_dimension_numbers<[2], [2], [1], [1], [0, 0, 0, 1, 1, 1], [0], [0]>} : vector<2x8x8xf32>, vector<2x8x8xf32>, vector<2x8x8xf32> -> vector<2x8x8xf32>
    "tpu.trace_stop"() : () -> ()
    %cst_34 = arith.constant 0.353553385 : f32
    %35 = vector.broadcast %cst_34 : f32 to vector<2x8x8xf32>
    %36 = arith.mulf %34, %35 : vector<2x8x8xf32>
    %cst_35 = arith.constant dense<0xFF800000> : vector<2x8xf32>
    %37 = vector.multi_reduction <maximumf>, %36, %cst_35 [2] : vector<2x8x8xf32> to vector<2x8xf32>
    %38 = vector.shape_cast %37 : vector<2x8xf32> to vector<2x8x1xf32>
    %39 = vector.broadcast %38 : vector<2x8x1xf32> to vector<2x8x8xf32>
    %40 = arith.subf %36, %39 : vector<2x8x8xf32>
    %41 = math.exp %40 : vector<2x8x8xf32>
    %cst_36 = arith.constant dense<0.000000e+00> : vector<2x8xf32>
    %42 = vector.multi_reduction <add>, %41, %cst_36 [2] : vector<2x8x8xf32> to vector<2x8xf32>
    %43 = vector.shape_cast %42 : vector<2x8xf32> to vector<2x8x1xf32>
    %44 = tpu.reciprocal %43 : vector<2x8x1xf32> -> vector<2x8x1xf32>
    %45 = vector.broadcast %44 : vector<2x8x1xf32> to vector<2x8x8xf32>
    %46 = arith.mulf %41, %45 : vector<2x8x8xf32>
    "tpu.trace_start"() <{level = 10 : i32, message = "bqk,bkd->bqd"}> : () -> ()
    %cst_37 = arith.constant dense<0.000000e+00> : vector<2x8x8xf32>
    %47 = tpu.matmul %46, %33, %cst_37 {dimension_numbers = #tpu.dot_dimension_numbers<[2], [1], [1], [2], [0, 0, 0, 1, 1, 2], [0], [0]>} : vector<2x8x8xf32>, vector<2x8x8xf32>, vector<2x8x8xf32> -> vector<2x8x8xf32>
    "tpu.trace_stop"() : () -> ()
    %48 = vector.shape_cast %47 : vector<2x8x8xf32> to vector<16x8xf32>
    %c0_38 = arith.constant 0 : index
    %c0_39 = arith.constant 0 : index
    %c0_40 = arith.constant 0 : index
    %c0_41 = arith.constant 0 : index
    %49 = vector.load %arg9[%c0_38, %c0_39, %c0_40, %c0_41] : memref<1x4x8x32xf32, #tpu.memory_space<vmem>>, vector<1x1x8x32xf32>
    %50 = vector.shape_cast %49 : vector<1x1x8x32xf32> to vector<8x32xf32>
    %cst_42 = arith.constant dense<0.000000e+00> : vector<16x32xf32>
    %51 = tpu.matmul %48, %50, %cst_42 {dimension_numbers = #tpu.dot_dimension_numbers<[1], [0], [0], [1], [0, 0, 1, 1], [], []>} : vector<16x8xf32>, vector<8x32xf32>, vector<16x32xf32> -> vector<16x32xf32>
    %52 = arith.addf %9, %51 : vector<16x32xf32>
    %c0_43 = arith.constant 0 : index
    %c1 = arith.constant 1 : index
    %c0_44 = arith.constant 0 : index
    %c0_45 = arith.constant 0 : index
    %53 = vector.load %arg3[%c0_43, %c1, %c0_44, %c0_45] : memref<1x4x32x8xf32, #tpu.memory_space<vmem>>, vector<1x1x32x8xf32>
    %54 = vector.shape_cast %53 : vector<1x1x32x8xf32> to vector<32x8xf32>
    %cst_46 = arith.constant dense<0.000000e+00> : vector<16x8xf32>
    %55 = tpu.matmul %4, %54, %cst_46 {dimension_numbers = #tpu.dot_dimension_numbers<[1], [0], [0], [1], [0, 0, 1, 1], [], []>} : vector<16x32xf32>, vector<32x8xf32>, vector<16x8xf32> -> vector<16x8xf32>
    %c0_47 = arith.constant 0 : index
    %c1_48 = arith.constant 1 : index
    %c0_49 = arith.constant 0 : index
    %c0_50 = arith.constant 0 : index
    %56 = vector.load %arg4[%c0_47, %c1_48, %c0_49, %c0_50] : memref<1x4x1x8xf32, #tpu.memory_space<vmem>>, vector<1x1x1x8xf32>
    %57 = vector.shape_cast %56 : vector<1x1x1x8xf32> to vector<1x8xf32>
    %58 = vector.broadcast %57 : vector<1x8xf32> to vector<16x8xf32>
    %59 = arith.addf %55, %58 : vector<16x8xf32>
    %60 = vector.shape_cast %59 : vector<16x8xf32> to vector<2x8x8xf32>
    %c0_51 = arith.constant 0 : index
    %c1_52 = arith.constant 1 : index
    %c0_53 = arith.constant 0 : index
    %c0_54 = arith.constant 0 : index
    %61 = vector.load %arg5[%c0_51, %c1_52, %c0_53, %c0_54] : memref<1x4x32x8xf32, #tpu.memory_space<vmem>>, vector<1x1x32x8xf32>
    %62 = vector.shape_cast %61 : vector<1x1x32x8xf32> to vector<32x8xf32>
    %cst_55 = arith.constant dense<0.000000e+00> : vector<16x8xf32>
    %63 = tpu.matmul %4, %62, %cst_55 {dimension_numbers = #tpu.dot_dimension_numbers<[1], [0], [0], [1], [0, 0, 1, 1], [], []>} : vector<16x32xf32>, vector<32x8xf32>, vector<16x8xf32> -> vector<16x8xf32>
    %c0_56 = arith.constant 0 : index
    %c1_57 = arith.constant 1 : index
    %c0_58 = arith.constant 0 : index
    %c0_59 = arith.constant 0 : index
    %64 = vector.load %arg6[%c0_56, %c1_57, %c0_58, %c0_59] : memref<1x4x1x8xf32, #tpu.memory_space<vmem>>, vector<1x1x1x8xf32>
    %65 = vector.shape_cast %64 : vector<1x1x1x8xf32> to vector<1x8xf32>
    %66 = vector.broadcast %65 : vector<1x8xf32> to vector<16x8xf32>
    %67 = arith.addf %63, %66 : vector<16x8xf32>
    %68 = vector.shape_cast %67 : vector<16x8xf32> to vector<2x8x8xf32>
    %c0_60 = arith.constant 0 : index
    %c1_61 = arith.constant 1 : index
    %c0_62 = arith.constant 0 : index
    %c0_63 = arith.constant 0 : index
    %69 = vector.load %arg7[%c0_60, %c1_61, %c0_62, %c0_63] : memref<1x4x32x8xf32, #tpu.memory_space<vmem>>, vector<1x1x32x8xf32>
    %70 = vector.shape_cast %69 : vector<1x1x32x8xf32> to vector<32x8xf32>
    %cst_64 = arith.constant dense<0.000000e+00> : vector<16x8xf32>
    %71 = tpu.matmul %4, %70, %cst_64 {dimension_numbers = #tpu.dot_dimension_numbers<[1], [0], [0], [1], [0, 0, 1, 1], [], []>} : vector<16x32xf32>, vector<32x8xf32>, vector<16x8xf32> -> vector<16x8xf32>
    %c0_65 = arith.constant 0 : index
    %c1_66 = arith.constant 1 : index
    %c0_67 = arith.constant 0 : index
    %c0_68 = arith.constant 0 : index
    %72 = vector.load %arg8[%c0_65, %c1_66, %c0_67, %c0_68] : memref<1x4x1x8xf32, #tpu.memory_space<vmem>>, vector<1x1x1x8xf32>
    %73 = vector.shape_cast %72 : vector<1x1x1x8xf32> to vector<1x8xf32>
    %74 = vector.broadcast %73 : vector<1x8xf32> to vector<16x8xf32>
    %75 = arith.addf %71, %74 : vector<16x8xf32>
    %76 = vector.shape_cast %75 : vector<16x8xf32> to vector<2x8x8xf32>
    "tpu.trace_start"() <{level = 10 : i32, message = "bqd,bkd->bqk"}> : () -> ()
    %cst_69 = arith.constant dense<0.000000e+00> : vector<2x8x8xf32>
    %77 = tpu.matmul %60, %68, %cst_69 {dimension_numbers = #tpu.dot_dimension_numbers<[2], [2], [1], [1], [0, 0, 0, 1, 1, 1], [0], [0]>} : vector<2x8x8xf32>, vector<2x8x8xf32>, vector<2x8x8xf32> -> vector<2x8x8xf32>
    "tpu.trace_stop"() : () -> ()
    %cst_70 = arith.constant 0.353553385 : f32
    %78 = vector.broadcast %cst_70 : f32 to vector<2x8x8xf32>
    %79 = arith.mulf %77, %78 : vector<2x8x8xf32>
    %cst_71 = arith.constant dense<0xFF800000> : vector<2x8xf32>
    %80 = vector.multi_reduction <maximumf>, %79, %cst_71 [2] : vector<2x8x8xf32> to vector<2x8xf32>
    %81 = vector.shape_cast %80 : vector<2x8xf32> to vector<2x8x1xf32>
    %82 = vector.broadcast %81 : vector<2x8x1xf32> to vector<2x8x8xf32>
    %83 = arith.subf %79, %82 : vector<2x8x8xf32>
    %84 = math.exp %83 : vector<2x8x8xf32>
    %cst_72 = arith.constant dense<0.000000e+00> : vector<2x8xf32>
    %85 = vector.multi_reduction <add>, %84, %cst_72 [2] : vector<2x8x8xf32> to vector<2x8xf32>
    %86 = vector.shape_cast %85 : vector<2x8xf32> to vector<2x8x1xf32>
    %87 = tpu.reciprocal %86 : vector<2x8x1xf32> -> vector<2x8x1xf32>
    %88 = vector.broadcast %87 : vector<2x8x1xf32> to vector<2x8x8xf32>
    %89 = arith.mulf %84, %88 : vector<2x8x8xf32>
    "tpu.trace_start"() <{level = 10 : i32, message = "bqk,bkd->bqd"}> : () -> ()
    %cst_73 = arith.constant dense<0.000000e+00> : vector<2x8x8xf32>
    %90 = tpu.matmul %89, %76, %cst_73 {dimension_numbers = #tpu.dot_dimension_numbers<[2], [1], [1], [2], [0, 0, 0, 1, 1, 2], [0], [0]>} : vector<2x8x8xf32>, vector<2x8x8xf32>, vector<2x8x8xf32> -> vector<2x8x8xf32>
    "tpu.trace_stop"() : () -> ()
    %91 = vector.shape_cast %90 : vector<2x8x8xf32> to vector<16x8xf32>
    %c0_74 = arith.constant 0 : index
    %c1_75 = arith.constant 1 : index
    %c0_76 = arith.constant 0 : index
    %c0_77 = arith.constant 0 : index
    %92 = vector.load %arg9[%c0_74, %c1_75, %c0_76, %c0_77] : memref<1x4x8x32xf32, #tpu.memory_space<vmem>>, vector<1x1x8x32xf32>
    %93 = vector.shape_cast %92 : vector<1x1x8x32xf32> to vector<8x32xf32>
    %cst_78 = arith.constant dense<0.000000e+00> : vector<16x32xf32>
    %94 = tpu.matmul %91, %93, %cst_78 {dimension_numbers = #tpu.dot_dimension_numbers<[1], [0], [0], [1], [0, 0, 1, 1], [], []>} : vector<16x8xf32>, vector<8x32xf32>, vector<16x32xf32> -> vector<16x32xf32>
    %95 = arith.addf %52, %94 : vector<16x32xf32>
    %c0_79 = arith.constant 0 : index
    %c2 = arith.constant 2 : index
    %c0_80 = arith.constant 0 : index
    %c0_81 = arith.constant 0 : index
    %96 = vector.load %arg3[%c0_79, %c2, %c0_80, %c0_81] : memref<1x4x32x8xf32, #tpu.memory_space<vmem>>, vector<1x1x32x8xf32>
    %97 = vector.shape_cast %96 : vector<1x1x32x8xf32> to vector<32x8xf32>
    %cst_82 = arith.constant dense<0.000000e+00> : vector<16x8xf32>
    %98 = tpu.matmul %4, %97, %cst_82 {dimension_numbers = #tpu.dot_dimension_numbers<[1], [0], [0], [1], [0, 0, 1, 1], [], []>} : vector<16x32xf32>, vector<32x8xf32>, vector<16x8xf32> -> vector<16x8xf32>
    %c0_83 = arith.constant 0 : index
    %c2_84 = arith.constant 2 : index
    %c0_85 = arith.constant 0 : index
    %c0_86 = arith.constant 0 : index
    %99 = vector.load %arg4[%c0_83, %c2_84, %c0_85, %c0_86] : memref<1x4x1x8xf32, #tpu.memory_space<vmem>>, vector<1x1x1x8xf32>
    %100 = vector.shape_cast %99 : vector<1x1x1x8xf32> to vector<1x8xf32>
    %101 = vector.broadcast %100 : vector<1x8xf32> to vector<16x8xf32>
    %102 = arith.addf %98, %101 : vector<16x8xf32>
    %103 = vector.shape_cast %102 : vector<16x8xf32> to vector<2x8x8xf32>
    %c0_87 = arith.constant 0 : index
    %c2_88 = arith.constant 2 : index
    %c0_89 = arith.constant 0 : index
    %c0_90 = arith.constant 0 : index
    %104 = vector.load %arg5[%c0_87, %c2_88, %c0_89, %c0_90] : memref<1x4x32x8xf32, #tpu.memory_space<vmem>>, vector<1x1x32x8xf32>
    %105 = vector.shape_cast %104 : vector<1x1x32x8xf32> to vector<32x8xf32>
    %cst_91 = arith.constant dense<0.000000e+00> : vector<16x8xf32>
    %106 = tpu.matmul %4, %105, %cst_91 {dimension_numbers = #tpu.dot_dimension_numbers<[1], [0], [0], [1], [0, 0, 1, 1], [], []>} : vector<16x32xf32>, vector<32x8xf32>, vector<16x8xf32> -> vector<16x8xf32>
    %c0_92 = arith.constant 0 : index
    %c2_93 = arith.constant 2 : index
    %c0_94 = arith.constant 0 : index
    %c0_95 = arith.constant 0 : index
    %107 = vector.load %arg6[%c0_92, %c2_93, %c0_94, %c0_95] : memref<1x4x1x8xf32, #tpu.memory_space<vmem>>, vector<1x1x1x8xf32>
    %108 = vector.shape_cast %107 : vector<1x1x1x8xf32> to vector<1x8xf32>
    %109 = vector.broadcast %108 : vector<1x8xf32> to vector<16x8xf32>
    %110 = arith.addf %106, %109 : vector<16x8xf32>
    %111 = vector.shape_cast %110 : vector<16x8xf32> to vector<2x8x8xf32>
    %c0_96 = arith.constant 0 : index
    %c2_97 = arith.constant 2 : index
    %c0_98 = arith.constant 0 : index
    %c0_99 = arith.constant 0 : index
    %112 = vector.load %arg7[%c0_96, %c2_97, %c0_98, %c0_99] : memref<1x4x32x8xf32, #tpu.memory_space<vmem>>, vector<1x1x32x8xf32>
    %113 = vector.shape_cast %112 : vector<1x1x32x8xf32> to vector<32x8xf32>
    %cst_100 = arith.constant dense<0.000000e+00> : vector<16x8xf32>
    %114 = tpu.matmul %4, %113, %cst_100 {dimension_numbers = #tpu.dot_dimension_numbers<[1], [0], [0], [1], [0, 0, 1, 1], [], []>} : vector<16x32xf32>, vector<32x8xf32>, vector<16x8xf32> -> vector<16x8xf32>
    %c0_101 = arith.constant 0 : index
    %c2_102 = arith.constant 2 : index
    %c0_103 = arith.constant 0 : index
    %c0_104 = arith.constant 0 : index
    %115 = vector.load %arg8[%c0_101, %c2_102, %c0_103, %c0_104] : memref<1x4x1x8xf32, #tpu.memory_space<vmem>>, vector<1x1x1x8xf32>
    %116 = vector.shape_cast %115 : vector<1x1x1x8xf32> to vector<1x8xf32>
    %117 = vector.broadcast %116 : vector<1x8xf32> to vector<16x8xf32>
    %118 = arith.addf %114, %117 : vector<16x8xf32>
    %119 = vector.shape_cast %118 : vector<16x8xf32> to vector<2x8x8xf32>
    "tpu.trace_start"() <{level = 10 : i32, message = "bqd,bkd->bqk"}> : () -> ()
    %cst_105 = arith.constant dense<0.000000e+00> : vector<2x8x8xf32>
    %120 = tpu.matmul %103, %111, %cst_105 {dimension_numbers = #tpu.dot_dimension_numbers<[2], [2], [1], [1], [0, 0, 0, 1, 1, 1], [0], [0]>} : vector<2x8x8xf32>, vector<2x8x8xf32>, vector<2x8x8xf32> -> vector<2x8x8xf32>
    "tpu.trace_stop"() : () -> ()
    %cst_106 = arith.constant 0.353553385 : f32
    %121 = vector.broadcast %cst_106 : f32 to vector<2x8x8xf32>
    %122 = arith.mulf %120, %121 : vector<2x8x8xf32>
    %cst_107 = arith.constant dense<0xFF800000> : vector<2x8xf32>
    %123 = vector.multi_reduction <maximumf>, %122, %cst_107 [2] : vector<2x8x8xf32> to vector<2x8xf32>
    %124 = vector.shape_cast %123 : vector<2x8xf32> to vector<2x8x1xf32>
    %125 = vector.broadcast %124 : vector<2x8x1xf32> to vector<2x8x8xf32>
    %126 = arith.subf %122, %125 : vector<2x8x8xf32>
    %127 = math.exp %126 : vector<2x8x8xf32>
    %cst_108 = arith.constant dense<0.000000e+00> : vector<2x8xf32>
    %128 = vector.multi_reduction <add>, %127, %cst_108 [2] : vector<2x8x8xf32> to vector<2x8xf32>
    %129 = vector.shape_cast %128 : vector<2x8xf32> to vector<2x8x1xf32>
    %130 = tpu.reciprocal %129 : vector<2x8x1xf32> -> vector<2x8x1xf32>
    %131 = vector.broadcast %130 : vector<2x8x1xf32> to vector<2x8x8xf32>
    %132 = arith.mulf %127, %131 : vector<2x8x8xf32>
    "tpu.trace_start"() <{level = 10 : i32, message = "bqk,bkd->bqd"}> : () -> ()
    %cst_109 = arith.constant dense<0.000000e+00> : vector<2x8x8xf32>
    %133 = tpu.matmul %132, %119, %cst_109 {dimension_numbers = #tpu.dot_dimension_numbers<[2], [1], [1], [2], [0, 0, 0, 1, 1, 2], [0], [0]>} : vector<2x8x8xf32>, vector<2x8x8xf32>, vector<2x8x8xf32> -> vector<2x8x8xf32>
    "tpu.trace_stop"() : () -> ()
    %134 = vector.shape_cast %133 : vector<2x8x8xf32> to vector<16x8xf32>
    %c0_110 = arith.constant 0 : index
    %c2_111 = arith.constant 2 : index
    %c0_112 = arith.constant 0 : index
    %c0_113 = arith.constant 0 : index
    %135 = vector.load %arg9[%c0_110, %c2_111, %c0_112, %c0_113] : memref<1x4x8x32xf32, #tpu.memory_space<vmem>>, vector<1x1x8x32xf32>
    %136 = vector.shape_cast %135 : vector<1x1x8x32xf32> to vector<8x32xf32>
    %cst_114 = arith.constant dense<0.000000e+00> : vector<16x32xf32>
    %137 = tpu.matmul %134, %136, %cst_114 {dimension_numbers = #tpu.dot_dimension_numbers<[1], [0], [0], [1], [0, 0, 1, 1], [], []>} : vector<16x8xf32>, vector<8x32xf32>, vector<16x32xf32> -> vector<16x32xf32>
    %138 = arith.addf %95, %137 : vector<16x32xf32>
    %c0_115 = arith.constant 0 : index
    %c3 = arith.constant 3 : index
    %c0_116 = arith.constant 0 : index
    %c0_117 = arith.constant 0 : index
    %139 = vector.load %arg3[%c0_115, %c3, %c0_116, %c0_117] : memref<1x4x32x8xf32, #tpu.memory_space<vmem>>, vector<1x1x32x8xf32>
    %140 = vector.shape_cast %139 : vector<1x1x32x8xf32> to vector<32x8xf32>
    %cst_118 = arith.constant dense<0.000000e+00> : vector<16x8xf32>
    %141 = tpu.matmul %4, %140, %cst_118 {dimension_numbers = #tpu.dot_dimension_numbers<[1], [0], [0], [1], [0, 0, 1, 1], [], []>} : vector<16x32xf32>, vector<32x8xf32>, vector<16x8xf32> -> vector<16x8xf32>
    %c0_119 = arith.constant 0 : index
    %c3_120 = arith.constant 3 : index
    %c0_121 = arith.constant 0 : index
    %c0_122 = arith.constant 0 : index
    %142 = vector.load %arg4[%c0_119, %c3_120, %c0_121, %c0_122] : memref<1x4x1x8xf32, #tpu.memory_space<vmem>>, vector<1x1x1x8xf32>
    %143 = vector.shape_cast %142 : vector<1x1x1x8xf32> to vector<1x8xf32>
    %144 = vector.broadcast %143 : vector<1x8xf32> to vector<16x8xf32>
    %145 = arith.addf %141, %144 : vector<16x8xf32>
    %146 = vector.shape_cast %145 : vector<16x8xf32> to vector<2x8x8xf32>
    %c0_123 = arith.constant 0 : index
    %c3_124 = arith.constant 3 : index
    %c0_125 = arith.constant 0 : index
    %c0_126 = arith.constant 0 : index
    %147 = vector.load %arg5[%c0_123, %c3_124, %c0_125, %c0_126] : memref<1x4x32x8xf32, #tpu.memory_space<vmem>>, vector<1x1x32x8xf32>
    %148 = vector.shape_cast %147 : vector<1x1x32x8xf32> to vector<32x8xf32>
    %cst_127 = arith.constant dense<0.000000e+00> : vector<16x8xf32>
    %149 = tpu.matmul %4, %148, %cst_127 {dimension_numbers = #tpu.dot_dimension_numbers<[1], [0], [0], [1], [0, 0, 1, 1], [], []>} : vector<16x32xf32>, vector<32x8xf32>, vector<16x8xf32> -> vector<16x8xf32>
    %c0_128 = arith.constant 0 : index
    %c3_129 = arith.constant 3 : index
    %c0_130 = arith.constant 0 : index
    %c0_131 = arith.constant 0 : index
    %150 = vector.load %arg6[%c0_128, %c3_129, %c0_130, %c0_131] : memref<1x4x1x8xf32, #tpu.memory_space<vmem>>, vector<1x1x1x8xf32>
    %151 = vector.shape_cast %150 : vector<1x1x1x8xf32> to vector<1x8xf32>
    %152 = vector.broadcast %151 : vector<1x8xf32> to vector<16x8xf32>
    %153 = arith.addf %149, %152 : vector<16x8xf32>
    %154 = vector.shape_cast %153 : vector<16x8xf32> to vector<2x8x8xf32>
    %c0_132 = arith.constant 0 : index
    %c3_133 = arith.constant 3 : index
    %c0_134 = arith.constant 0 : index
    %c0_135 = arith.constant 0 : index
    %155 = vector.load %arg7[%c0_132, %c3_133, %c0_134, %c0_135] : memref<1x4x32x8xf32, #tpu.memory_space<vmem>>, vector<1x1x32x8xf32>
    %156 = vector.shape_cast %155 : vector<1x1x32x8xf32> to vector<32x8xf32>
    %cst_136 = arith.constant dense<0.000000e+00> : vector<16x8xf32>
    %157 = tpu.matmul %4, %156, %cst_136 {dimension_numbers = #tpu.dot_dimension_numbers<[1], [0], [0], [1], [0, 0, 1, 1], [], []>} : vector<16x32xf32>, vector<32x8xf32>, vector<16x8xf32> -> vector<16x8xf32>
    %c0_137 = arith.constant 0 : index
    %c3_138 = arith.constant 3 : index
    %c0_139 = arith.constant 0 : index
    %c0_140 = arith.constant 0 : index
    %158 = vector.load %arg8[%c0_137, %c3_138, %c0_139, %c0_140] : memref<1x4x1x8xf32, #tpu.memory_space<vmem>>, vector<1x1x1x8xf32>
    %159 = vector.shape_cast %158 : vector<1x1x1x8xf32> to vector<1x8xf32>
    %160 = vector.broadcast %159 : vector<1x8xf32> to vector<16x8xf32>
    %161 = arith.addf %157, %160 : vector<16x8xf32>
    %162 = vector.shape_cast %161 : vector<16x8xf32> to vector<2x8x8xf32>
    "tpu.trace_start"() <{level = 10 : i32, message = "bqd,bkd->bqk"}> : () -> ()
    %cst_141 = arith.constant dense<0.000000e+00> : vector<2x8x8xf32>
    %163 = tpu.matmul %146, %154, %cst_141 {dimension_numbers = #tpu.dot_dimension_numbers<[2], [2], [1], [1], [0, 0, 0, 1, 1, 1], [0], [0]>} : vector<2x8x8xf32>, vector<2x8x8xf32>, vector<2x8x8xf32> -> vector<2x8x8xf32>
    "tpu.trace_stop"() : () -> ()
    %cst_142 = arith.constant 0.353553385 : f32
    %164 = vector.broadcast %cst_142 : f32 to vector<2x8x8xf32>
    %165 = arith.mulf %163, %164 : vector<2x8x8xf32>
    %cst_143 = arith.constant dense<0xFF800000> : vector<2x8xf32>
    %166 = vector.multi_reduction <maximumf>, %165, %cst_143 [2] : vector<2x8x8xf32> to vector<2x8xf32>
    %167 = vector.shape_cast %166 : vector<2x8xf32> to vector<2x8x1xf32>
    %168 = vector.broadcast %167 : vector<2x8x1xf32> to vector<2x8x8xf32>
    %169 = arith.subf %165, %168 : vector<2x8x8xf32>
    %170 = math.exp %169 : vector<2x8x8xf32>
    %cst_144 = arith.constant dense<0.000000e+00> : vector<2x8xf32>
    %171 = vector.multi_reduction <add>, %170, %cst_144 [2] : vector<2x8x8xf32> to vector<2x8xf32>
    %172 = vector.shape_cast %171 : vector<2x8xf32> to vector<2x8x1xf32>
    %173 = tpu.reciprocal %172 : vector<2x8x1xf32> -> vector<2x8x1xf32>
    %174 = vector.broadcast %173 : vector<2x8x1xf32> to vector<2x8x8xf32>
    %175 = arith.mulf %170, %174 : vector<2x8x8xf32>
    "tpu.trace_start"() <{level = 10 : i32, message = "bqk,bkd->bqd"}> : () -> ()
    %cst_145 = arith.constant dense<0.000000e+00> : vector<2x8x8xf32>
    %176 = tpu.matmul %175, %162, %cst_145 {dimension_numbers = #tpu.dot_dimension_numbers<[2], [1], [1], [2], [0, 0, 0, 1, 1, 2], [0], [0]>} : vector<2x8x8xf32>, vector<2x8x8xf32>, vector<2x8x8xf32> -> vector<2x8x8xf32>
    "tpu.trace_stop"() : () -> ()
    %177 = vector.shape_cast %176 : vector<2x8x8xf32> to vector<16x8xf32>
    %c0_146 = arith.constant 0 : index
    %c3_147 = arith.constant 3 : index
    %c0_148 = arith.constant 0 : index
    %c0_149 = arith.constant 0 : index
    %178 = vector.load %arg9[%c0_146, %c3_147, %c0_148, %c0_149] : memref<1x4x8x32xf32, #tpu.memory_space<vmem>>, vector<1x1x8x32xf32>
    %179 = vector.shape_cast %178 : vector<1x1x8x32xf32> to vector<8x32xf32>
    %cst_150 = arith.constant dense<0.000000e+00> : vector<16x32xf32>
    %180 = tpu.matmul %177, %179, %cst_150 {dimension_numbers = #tpu.dot_dimension_numbers<[1], [0], [0], [1], [0, 0, 1, 1], [], []>} : vector<16x8xf32>, vector<8x32xf32>, vector<16x32xf32> -> vector<16x32xf32>
    %181 = arith.addf %138, %180 : vector<16x32xf32>
    %182 = arith.addf %4, %181 : vector<16x32xf32>
    %c0_151 = arith.constant 0 : index
    %c0_152 = arith.constant 0 : index
    %c0_153 = arith.constant 0 : index
    %183 = vector.load %arg11[%c0_151, %c0_152, %c0_153] : memref<1x1x32xf32, #tpu.memory_space<vmem>>, vector<1x1x32xf32>
    %184 = vector.shape_cast %183 : vector<1x1x32xf32> to vector<1x32xf32>
    %c0_154 = arith.constant 0 : index
    %c0_155 = arith.constant 0 : index
    %c0_156 = arith.constant 0 : index
    %185 = vector.load %arg12[%c0_154, %c0_155, %c0_156] : memref<1x1x32xf32, #tpu.memory_space<vmem>>, vector<1x1x32xf32>
    %186 = vector.shape_cast %185 : vector<1x1x32xf32> to vector<1x32xf32>
    %cst_157 = arith.constant dense<0.000000e+00> : vector<16xf32>
    %187 = vector.multi_reduction <add>, %182, %cst_157 [1] : vector<16x32xf32> to vector<16xf32>
    %188 = vector.shape_cast %187 : vector<16xf32> to vector<16x1xf32>
    %cst_158 = arith.constant 3.200000e+01 : f32
    %189 = vector.broadcast %cst_158 : f32 to vector<16x1xf32>
    %190 = arith.divf %188, %189 : vector<16x1xf32>
    %191 = vector.broadcast %190 : vector<16x1xf32> to vector<16x32xf32>
    %192 = arith.subf %182, %191 : vector<16x32xf32>
    %193 = arith.mulf %192, %192 : vector<16x32xf32>
    %cst_159 = arith.constant dense<0.000000e+00> : vector<16xf32>
    %194 = vector.multi_reduction <add>, %193, %cst_159 [1] : vector<16x32xf32> to vector<16xf32>
    %195 = vector.shape_cast %194 : vector<16xf32> to vector<16x1xf32>
    %cst_160 = arith.constant 3.200000e+01 : f32
    %196 = vector.broadcast %cst_160 : f32 to vector<16x1xf32>
    %197 = arith.divf %195, %196 : vector<16x1xf32>
    %cst_161 = arith.constant 9.99999974E-6 : f32
    %198 = vector.broadcast %cst_161 : f32 to vector<16x1xf32>
    %199 = arith.addf %197, %198 : vector<16x1xf32>
    %200 = math.rsqrt %199 : vector<16x1xf32>
    %201 = vector.broadcast %200 : vector<16x1xf32> to vector<16x32xf32>
    %202 = arith.mulf %192, %201 : vector<16x32xf32>
    %203 = vector.broadcast %184 : vector<1x32xf32> to vector<16x32xf32>
    %204 = arith.mulf %202, %203 : vector<16x32xf32>
    %205 = vector.broadcast %186 : vector<1x32xf32> to vector<16x32xf32>
    %206 = arith.addf %204, %205 : vector<16x32xf32>
    %c0_162 = arith.constant 0 : index
    %c0_163 = arith.constant 0 : index
    %c0_164 = arith.constant 0 : index
    %207 = vector.load %arg13[%c0_162, %c0_163, %c0_164] : memref<1x32x64xf32, #tpu.memory_space<vmem>>, vector<1x32x64xf32>
    %208 = vector.shape_cast %207 : vector<1x32x64xf32> to vector<32x64xf32>
    %cst_165 = arith.constant dense<0.000000e+00> : vector<16x64xf32>
    %209 = tpu.matmul %206, %208, %cst_165 {dimension_numbers = #tpu.dot_dimension_numbers<[1], [0], [0], [1], [0, 0, 1, 1], [], []>} : vector<16x32xf32>, vector<32x64xf32>, vector<16x64xf32> -> vector<16x64xf32>
    %c0_166 = arith.constant 0 : index
    %c0_167 = arith.constant 0 : index
    %c0_168 = arith.constant 0 : index
    %210 = vector.load %arg14[%c0_166, %c0_167, %c0_168] : memref<1x1x64xf32, #tpu.memory_space<vmem>>, vector<1x1x64xf32>
    %211 = vector.shape_cast %210 : vector<1x1x64xf32> to vector<1x64xf32>
    %212 = vector.broadcast %211 : vector<1x64xf32> to vector<16x64xf32>
    %213 = arith.addf %209, %212 : vector<16x64xf32>
    %cst_169 = arith.constant 0.000000e+00 : f32
    %214 = vector.broadcast %cst_169 : f32 to vector<16x64xf32>
    %215 = arith.maximumf %213, %214 : vector<16x64xf32>
    %c0_170 = arith.constant 0 : index
    %c0_171 = arith.constant 0 : index
    %c0_172 = arith.constant 0 : index
    %216 = vector.load %arg15[%c0_170, %c0_171, %c0_172] : memref<1x64x32xf32, #tpu.memory_space<vmem>>, vector<1x64x32xf32>
    %217 = vector.shape_cast %216 : vector<1x64x32xf32> to vector<64x32xf32>
    %cst_173 = arith.constant dense<0.000000e+00> : vector<16x32xf32>
    %218 = tpu.matmul %215, %217, %cst_173 {dimension_numbers = #tpu.dot_dimension_numbers<[1], [0], [0], [1], [0, 0, 1, 1], [], []>} : vector<16x64xf32>, vector<64x32xf32>, vector<16x32xf32> -> vector<16x32xf32>
    %c0_174 = arith.constant 0 : index
    %c0_175 = arith.constant 0 : index
    %c0_176 = arith.constant 0 : index
    %219 = vector.load %arg16[%c0_174, %c0_175, %c0_176] : memref<1x1x32xf32, #tpu.memory_space<vmem>>, vector<1x1x32xf32>
    %220 = vector.shape_cast %219 : vector<1x1x32xf32> to vector<1x32xf32>
    %221 = vector.broadcast %220 : vector<1x32xf32> to vector<16x32xf32>
    %222 = arith.addf %218, %221 : vector<16x32xf32>
    %223 = arith.addf %206, %222 : vector<16x32xf32>
    %c0_177 = arith.constant 0 : index
    %c0_178 = arith.constant 0 : index
    %c0_179 = arith.constant 0 : index
    %224 = vector.load %arg17[%c0_177, %c0_178, %c0_179] : memref<1x1x32xf32, #tpu.memory_space<vmem>>, vector<1x1x32xf32>
    %225 = vector.shape_cast %224 : vector<1x1x32xf32> to vector<1x32xf32>
    %c0_180 = arith.constant 0 : index
    %c0_181 = arith.constant 0 : index
    %c0_182 = arith.constant 0 : index
    %226 = vector.load %arg18[%c0_180, %c0_181, %c0_182] : memref<1x1x32xf32, #tpu.memory_space<vmem>>, vector<1x1x32xf32>
    %227 = vector.shape_cast %226 : vector<1x1x32xf32> to vector<1x32xf32>
    %cst_183 = arith.constant dense<0.000000e+00> : vector<16xf32>
    %228 = vector.multi_reduction <add>, %223, %cst_183 [1] : vector<16x32xf32> to vector<16xf32>
    %229 = vector.shape_cast %228 : vector<16xf32> to vector<16x1xf32>
    %cst_184 = arith.constant 3.200000e+01 : f32
    %230 = vector.broadcast %cst_184 : f32 to vector<16x1xf32>
    %231 = arith.divf %229, %230 : vector<16x1xf32>
    %232 = vector.broadcast %231 : vector<16x1xf32> to vector<16x32xf32>
    %233 = arith.subf %223, %232 : vector<16x32xf32>
    %234 = arith.mulf %233, %233 : vector<16x32xf32>
    %cst_185 = arith.constant dense<0.000000e+00> : vector<16xf32>
    %235 = vector.multi_reduction <add>, %234, %cst_185 [1] : vector<16x32xf32> to vector<16xf32>
    %236 = vector.shape_cast %235 : vector<16xf32> to vector<16x1xf32>
    %cst_186 = arith.constant 3.200000e+01 : f32
    %237 = vector.broadcast %cst_186 : f32 to vector<16x1xf32>
    %238 = arith.divf %236, %237 : vector<16x1xf32>
    %cst_187 = arith.constant 9.99999974E-6 : f32
    %239 = vector.broadcast %cst_187 : f32 to vector<16x1xf32>
    %240 = arith.addf %238, %239 : vector<16x1xf32>
    %241 = math.rsqrt %240 : vector<16x1xf32>
    %242 = vector.broadcast %241 : vector<16x1xf32> to vector<16x32xf32>
    %243 = arith.mulf %233, %242 : vector<16x32xf32>
    %244 = vector.broadcast %225 : vector<1x32xf32> to vector<16x32xf32>
    %245 = arith.mulf %243, %244 : vector<16x32xf32>
    %246 = vector.broadcast %227 : vector<1x32xf32> to vector<16x32xf32>
    %247 = arith.addf %245, %246 : vector<16x32xf32>
    %248 = vector.shape_cast %247 : vector<16x32xf32> to vector<2x8x32xf32>
    %c0_188 = arith.constant 0 : index
    %c0_189 = arith.constant 0 : index
    %c0_190 = arith.constant 0 : index
    %249 = vector.load %arg20[%c0_188, %c0_189, %c0_190] : memref<2x8x32xf32, #tpu.memory_space<vmem>>, vector<2x8x32xf32>
    tpu.vector_store %arg20[%c0_188, %c0_189, %c0_190], %248 {strides = array<i32>} : memref<2x8x32xf32, #tpu.memory_space<vmem>>, vector<2x8x32xf32>,
    %c1_i32 = arith.constant 1 : i32
    %250 = arith.cmpi eq, %arg1, %c1_i32 : i32
    %251 = arith.extui %250 : i1 to i32
    %c0_i32_191 = arith.constant 0 : i32
    %252 = arith.cmpi ne, %251, %c0_i32_191 : i32
    scf.if %252 {
      %c0_192 = arith.constant 0 : index
      %c0_193 = arith.constant 0 : index
      %c0_194 = arith.constant 0 : index
      %253 = vector.load %arg20[%c0_192, %c0_193, %c0_194] : memref<2x8x32xf32, #tpu.memory_space<vmem>>, vector<2x8x32xf32>
      %c0_195 = arith.constant 0 : index
      %c0_196 = arith.constant 0 : index
      %c0_197 = arith.constant 0 : index
      %254 = vector.load %arg19[%c0_195, %c0_196, %c0_197] : memref<2x8x32xf32, #tpu.memory_space<vmem>>, vector<2x8x32xf32>
      tpu.vector_store %arg19[%c0_195, %c0_196, %c0_197], %253 {strides = array<i32>} : memref<2x8x32xf32, #tpu.memory_space<vmem>>, vector<2x8x32xf32>,
    } else {
    }
    return
  }
  func.func @transform_0(%arg0: i32, %arg1: i32) -> (i32, i32, i32) {
    %c0_i32 = arith.constant 0 : i32
    %c0_i32_0 = arith.constant 0 : i32
    %c0_i32_1 = arith.constant 0 : i32
    return %arg0, %c0_i32, %c0_i32_0 : i32, i32, i32
  }
  func.func @transform_1(%arg0: i32, %arg1: i32) -> (i32, i32, i32, i32) {
    %c0_i32 = arith.constant 0 : i32
    %c0_i32_0 = arith.constant 0 : i32
    %c0_i32_1 = arith.constant 0 : i32
    %c0_i32_2 = arith.constant 0 : i32
    return %arg1, %c0_i32, %c0_i32_0, %c0_i32_1 : i32, i32, i32, i32
  }
  func.func @transform_2(%arg0: i32, %arg1: i32) -> (i32, i32, i32, i32) {
    %c0_i32 = arith.constant 0 : i32
    %c0_i32_0 = arith.constant 0 : i32
    %c0_i32_1 = arith.constant 0 : i32
    %c0_i32_2 = arith.constant 0 : i32
    return %arg1, %c0_i32, %c0_i32_0, %c0_i32_1 : i32, i32, i32, i32
  }
  func.func @transform_3(%arg0: i32, %arg1: i32) -> (i32, i32, i32, i32) {
    %c0_i32 = arith.constant 0 : i32
    %c0_i32_0 = arith.constant 0 : i32
    %c0_i32_1 = arith.constant 0 : i32
    %c0_i32_2 = arith.constant 0 : i32
    return %arg1, %c0_i32, %c0_i32_0, %c0_i32_1 : i32, i32, i32, i32
  }
  func.func @transform_4(%arg0: i32, %arg1: i32) -> (i32, i32, i32, i32) {
    %c0_i32 = arith.constant 0 : i32
    %c0_i32_0 = arith.constant 0 : i32
    %c0_i32_1 = arith.constant 0 : i32
    %c0_i32_2 = arith.constant 0 : i32
    return %arg1, %c0_i32, %c0_i32_0, %c0_i32_1 : i32, i32, i32, i32
  }
  func.func @transform_5(%arg0: i32, %arg1: i32) -> (i32, i32, i32, i32) {
    %c0_i32 = arith.constant 0 : i32
    %c0_i32_0 = arith.constant 0 : i32
    %c0_i32_1 = arith.constant 0 : i32
    %c0_i32_2 = arith.constant 0 : i32
    return %arg1, %c0_i32, %c0_i32_0, %c0_i32_1 : i32, i32, i32, i32
  }
  func.func @transform_6(%arg0: i32, %arg1: i32) -> (i32, i32, i32, i32) {
    %c0_i32 = arith.constant 0 : i32
    %c0_i32_0 = arith.constant 0 : i32
    %c0_i32_1 = arith.constant 0 : i32
    %c0_i32_2 = arith.constant 0 : i32
    return %arg1, %c0_i32, %c0_i32_0, %c0_i32_1 : i32, i32, i32, i32
  }
  func.func @transform_7(%arg0: i32, %arg1: i32) -> (i32, i32, i32, i32) {
    %c0_i32 = arith.constant 0 : i32
    %c0_i32_0 = arith.constant 0 : i32
    %c0_i32_1 = arith.constant 0 : i32
    %c0_i32_2 = arith.constant 0 : i32
    return %arg1, %c0_i32, %c0_i32_0, %c0_i32_1 : i32, i32, i32, i32
  }
  func.func @transform_8(%arg0: i32, %arg1: i32) -> (i32, i32, i32) {
    %c0_i32 = arith.constant 0 : i32
    %c0_i32_0 = arith.constant 0 : i32
    %c0_i32_1 = arith.constant 0 : i32
    return %arg1, %c0_i32, %c0_i32_0 : i32, i32, i32
  }
  func.func @transform_9(%arg0: i32, %arg1: i32) -> (i32, i32, i32) {
    %c0_i32 = arith.constant 0 : i32
    %c0_i32_0 = arith.constant 0 : i32
    %c0_i32_1 = arith.constant 0 : i32
    return %arg1, %c0_i32, %c0_i32_0 : i32, i32, i32
  }
  func.func @transform_10(%arg0: i32, %arg1: i32) -> (i32, i32, i32) {
    %c0_i32 = arith.constant 0 : i32
    %c0_i32_0 = arith.constant 0 : i32
    %c0_i32_1 = arith.constant 0 : i32
    return %arg1, %c0_i32, %c0_i32_0 : i32, i32, i32
  }
  func.func @transform_11(%arg0: i32, %arg1: i32) -> (i32, i32, i32) {
    %c0_i32 = arith.constant 0 : i32
    %c0_i32_0 = arith.constant 0 : i32
    %c0_i32_1 = arith.constant 0 : i32
    return %arg1, %c0_i32, %c0_i32_0 : i32, i32, i32
  }
  func.func @transform_12(%arg0: i32, %arg1: i32) -> (i32, i32, i32) {
    %c0_i32 = arith.constant 0 : i32
    %c0_i32_0 = arith.constant 0 : i32
    %c0_i32_1 = arith.constant 0 : i32
    return %arg1, %c0_i32, %c0_i32_0 : i32, i32, i32
  }
  func.func @transform_13(%arg0: i32, %arg1: i32) -> (i32, i32, i32) {
    %c0_i32 = arith.constant 0 : i32
    %c0_i32_0 = arith.constant 0 : i32
    %c0_i32_1 = arith.constant 0 : i32
    return %arg1, %c0_i32, %c0_i32_0 : i32, i32, i32
  }
  func.func @transform_14(%arg0: i32, %arg1: i32) -> (i32, i32, i32) {
    %c0_i32 = arith.constant 0 : i32
    %c0_i32_0 = arith.constant 0 : i32
    %c0_i32_1 = arith.constant 0 : i32
    return %arg1, %c0_i32, %c0_i32_0 : i32, i32, i32
  }
  func.func @transform_15(%arg0: i32, %arg1: i32) -> (i32, i32, i32) {
    %c0_i32 = arith.constant 0 : i32
    %c0_i32_0 = arith.constant 0 : i32
    %c0_i32_1 = arith.constant 0 : i32
    return %arg1, %c0_i32, %c0_i32_0 : i32, i32, i32
  }
  func.func @transform_16(%arg0: i32, %arg1: i32) -> (i32, i32, i32) {
    %c0_i32 = arith.constant 0 : i32
    %c0_i32_0 = arith.constant 0 : i32
    %c0_i32_1 = arith.constant 0 : i32
    return %arg1, %c0_i32, %c0_i32_0 : i32, i32, i32
  }
  func.func @transform_17(%arg0: i32, %arg1: i32) -> (i32, i32, i32) {
    %c0_i32 = arith.constant 0 : i32
    %c0_i32_0 = arith.constant 0 : i32
    %c0_i32_1 = arith.constant 0 : i32
    return %arg0, %c0_i32, %c0_i32_0 : i32, i32, i32
  }
}

</mosaic_0001>

<bundles_post_ra>
// kernel: tpu_custom_call.1
= control target key start
LH: loop header
LB: loop body
LE: loop exit
PB: predicated region body
PF: predicated region fallthrough
CT: control target
= control target key end

     0   :  { %s3189_s0 = inlined_call_operand.vmem [shape: f32[2,8,32], index: 0, kind: input, shape index: {}]   ;;  %s3190_s1 = inlined_call_operand.vmem [shape: f32[2,4,32,8], index: 1, kind: input, shape index: {}]   ;;  %s3191_s2 = inlined_call_operand.vmem [shape: f32[2,4,1,8], index: 2, kind: input, shape index: {}]   ;;  %s3192_s3 = inlined_call_operand.vmem [shape: f32[2,4,32,8], index: 3, kind: input, shape index: {}]   ;;  %s3193_s4 = inlined_call_operand.vmem [shape: f32[2,4,1,8], index: 4, kind: input, shape index: {}]   ;;  %s3194_s5 = inlined_call_operand.vmem [shape: f32[2,4,32,8], index: 5, kind: input, shape index: {}]   ;;  %s3195_s6 = inlined_call_operand.vmem [shape: f32[2,4,1,8], index: 6, kind: input, shape index: {}]   ;;  %s3196_s7 = inlined_call_operand.vmem [shape: f32[2,4,8,32], index: 7, kind: input, shape index: {}]   ;;  %s3197_s8 = inlined_call_operand.vmem [shape: f32[2,1,32], index: 8, kind: input, shape index: {}]   ;;  %s3198_s9 = inlined_call_operand.vmem [shape: f32[2,1,32], index: 9, kind: input, shape index: {}]   ;;  %s3199_s10 = inlined_call_operand.vmem [shape: f32[2,1,32], index: 10, kind: input, shape index: {}]   ;;  %s3200_s11 = inlined_call_operand.vmem [shape: f32[2,32,64], index: 11, kind: input, shape index: {}]   ;;  %s3201_s12 = inlined_call_operand.vmem [shape: f32[2,1,64], index: 12, kind: input, shape index: {}]   ;;  %s3202_s13 = inlined_call_operand.vmem [shape: f32[2,64,32], index: 13, kind: input, shape index: {}]   ;;  %s3203_s14 = inlined_call_operand.vmem [shape: f32[2,1,32], index: 14, kind: input, shape index: {}]   ;;  %s3204_s15 = inlined_call_operand.vmem [shape: f32[2,1,32], index: 15, kind: input, shape index: {}]   ;;  %s3205_s16 = inlined_call_operand.vmem [shape: f32[2,1,32], index: 16, kind: input, shape index: {}]   ;;  %s3206_s17 = inlined_call_operand.hbm [shape: f32[2,8,32], index: 17, kind: output, shape index: {}]  }
   0x1   :  { %3214 = sst [smem:[#allocation13_spill]] %s3189_s0 }
   0x2   :  { %3215 = sst [smem:[#allocation14_spill]] %s3190_s1 }
   0x3   :  { %3216 = sst [smem:[#allocation15_spill]] %s3191_s2 }
   0x4   :  { %3217 = sst [smem:[#allocation16_spill]] %s3192_s3 }
   0x5   :  { %3218 = sst [smem:[#allocation17_spill]] %s3193_s4 }
   0x6   :  { %3219 = sst [smem:[#allocation18_spill]] %s3194_s5 }
   0x7   :  { %3220 = sst [smem:[#allocation19_spill]] %s3195_s6 }
   0x8   :  { %3221 = sst [smem:[#allocation20_spill]] %s3196_s7 }
   0x9   :  { %3222 = sst [smem:[#allocation21_spill]] %s3206_s17 }
   0xa   :  { %22 = vsyncpa [#allocation4], 0  ;;  %s2798_s24 = smov 0   ;;  %s2800_s25 = smov 0  }
   0xb   :  { %s2802_s26 = smov 0  }
   0xc LB: > { %3223 = sst [smem:[#allocation6_spill]] %s2694_s24  ;;  %s37_s28 = sadd.s32 1, %s2698_s25  ;;  %s2702_s26 = sphi %s2802_s26, %s28_s26   ;;  %s2698_s25 = sphi %s2800_s25, %s3252_s25   ;;  %s2694_s24 = sphi %s2798_s24, %s3251_s24  }
   0xd   : > { %3224 = sst [smem:[#allocation7_spill]] %s2698_s25  ;;  %p38_p0 = scmp.ge.s32.totalorder %s37_s28, 2 }
   0xe   : > { %3225 = sst [smem:[#allocation8_spill]] %s2702_s26  ;;  %p2417_p1 = scmp.ge.s32.totalorder %s2702_s26, 1 }
   0xf   : > { %p644_p2 = scmp.lt.s32.totalorder %s2702_s26, 3  ;;  %s3254_s28 = smov (%p38_p0, %s37_s28), 0 }
  0x10   : > { %3226 = sst [smem:[#allocation9_spill]] %s3254_s28 }
  0x11   : > { %p645_p3 = pnand %p2417_p1, %p644_p2 }
  0x13   : > { %648 = sbr.rel (%p645_p3) target bundleno = 3312 (0xcf0), region = 88 }
  0x18   : > { %p760_p4 = scmp.lt.s32.totalorder %s2694_s24, 1  ;;  %s3227_s1 = sld [smem:[#allocation14_spill]] }
  0x19   : > { %s3229_s2 = sld [smem:[#allocation15_spill]] }
  0x1a   : > { %s2821_s29 = scalar_select %p760_p4, %s2694_s24, 1 }
  0x1b   : > { %s3231_s3 = sld [smem:[#allocation16_spill]] }
  0x1c   : > { %s2547_s0 = sshll.u32 %s2821_s29, 7  ;;  %s2420_s30 = sshll.u32 %s2821_s29, 2 }
  0x1d   : > { %s3233_s4 = sld [smem:[#allocation17_spill]]  ;;  %s816_s18 = scalar_lea.vmem %s3203_s14, %s2821_s29 }
  0x1e   : > { %s2828_s20 = scalar_lea.vmem %s3227_s1, %s2547_s0  ;;  %s3234_s5 = sld [smem:[#allocation18_spill]] }
  0x1f   : > { %3228 = sst [smem:[#allocation10_spill]] %s2828_s20  ;;  %s2833_s23 = scalar_lea.vmem %s3229_s2, %s2420_s30 }
  0x20   : > { %3230 = sst [smem:[#allocation11_spill]] %s2833_s23  ;;  %s2550_s23 = sshll.u32 %s2821_s29, 5 }
  0x21   : > { %s2838_s25 = scalar_lea.vmem %s3231_s3, %s2547_s0  ;;  %s3235_s6 = sld [smem:[#allocation19_spill]] }
  0x22   : > { %3232 = sst [smem:[#allocation12_spill]] %s2838_s25  ;;  %s2552_s25 = sshll.u32 %s2821_s29, 6 }
  0x23   : > { %s2843_s24 = scalar_lea.vmem %s3233_s4, %s2420_s30  ;;  %s3236_s7 = sld [smem:[#allocation20_spill]] }
  0x24   : > { %s2848_s1 = scalar_lea.vmem %s3234_s5, %s2547_s0  ;;  %s2876_s5 = scalar_lea.vmem %s3200_s11, %s2550_s23 }
  0x25   : > { %s822_s0 = scalar_lea.vmem %s3205_s16, %s2821_s29  ;;  %s3237_s27 = sld [smem:[#allocation6_spill]] }
  0x27   : > { %s2853_s2 = scalar_lea.vmem %s3235_s6, %s2420_s30  ;;  %s819_s30 = scalar_lea.vmem %s3204_s15, %s2821_s29 }
  0x29   : > { %s2863_s17 = scalar_lea.vmem %s3236_s7, %s2550_s23  ;;  %s2886_s7 = scalar_lea.vmem %s3202_s13, %s2552_s25 }
  0x2b   : > { %p2433_p5 = scmp.ne.s32.totalorder %s3237_s27, 0 }
  0x2c   : > { %s3238_s6 = sld [smem:[#allocation13_spill]] (!%p2433_p5) }
  0x2d   : > { %827 = sbr.rel (%p2433_p5) target bundleno = 53 (0x35), region = 92 }
  0x32   : > { %v828_v0 = vld [vmem:[%s3238_s6] sm:$0xff]  ;;  %vm830_vm0 = vcmask 261120   ;;  %v829_v1 = vld [vmem:[%s3238_s6 + $0x8] sm:$0xff] }
  0x33   : > { %831 = vst.msk [vmem:[#allocation2] sm:$0xff] %vm830_vm0, %v828_v0 }
  0x34   : > { %832 = vst.msk [vmem:[#allocation2 + $0x8] sm:$0xff] %vm830_vm0, %v829_v1 }
  0x35 PF: > { %s3239_s21 = sld [smem:[#allocation12_spill]]  ;;  %vm848_vm1 = vcmask 261120   ;;  %v2587_v12 = vld [vmem:[%s2843_s24] ss:$0 sm:$0xff]  ;;  %vm940_vm2 = vcmask 64512   ;;  %v912_v28 = vld [vmem:[%s2848_s1 + $0x18] sm:$0xff]  ;;  %s3242_s23 = scalar_lea.vmem %s3197_s8, %s2821_s29 }
  0x36   : > { %s3240_s4 = sld [smem:[#allocation10_spill]]  ;;  %v911_v29 = vld [vmem:[%s2848_s1 + $0x10] sm:$0xff]  ;;  %929 = vmatpush.msra.mxu2 %v912_v28  ;;  %v910_v30 = vld [vmem:[%s2848_s1 + $0x8] sm:$0xff]  ;;  %v909_v31 = vld [vmem:[%s2848_s1] sm:$0xff]  ;;  %s3244_s22 = scalar_lea.vmem %s3199_s10, %s2821_s29 }
  0x37   : > { %s3241_s3 = sld [smem:[#allocation11_spill]]  ;;  %v2589_v42 = vld [vmem:[%s2853_s2] ss:$0 sm:$0xff]  ;;  %s3245_s25 = scalar_lea.vmem %s3201_s12, %s2821_s29 }
  0x38   : > { %930 = vmatpush.msra.mxu2 %v911_v29  ;;  %v1089_v56 = vld [vmem:[%s2863_s17] sm:$0xff] }
  0x3a   : > { %v2914_v9 = vld [vmem:[#allocation2] sm:$0xff]  ;;  %931 = vmatpush.msra.mxu2 %v910_v30 }
  0x3b   : > { %v881_v2 = vld [vmem:[%s3239_s21 + $0x18] sm:$0xff]  ;;  %v880_v3 = vld [vmem:[%s3239_s21 + $0x10] sm:$0xff]  ;;  %v879_v6 = vld [vmem:[%s3239_s21 + $0x8] sm:$0xff] }
  0x3c   : > { %v843_v4 = vld [vmem:[%s3240_s4 + $0x18] sm:$0xff]  ;;  %898 = vmatpush.msra.mxu1 %v881_v2  ;;  %v842_v5 = vld [vmem:[%s3240_s4 + $0x10] sm:$0xff]  ;;  %v878_v7 = vld [vmem:[%s3239_s21] sm:$0xff]  ;;  %932 = vmatpush.msra.mxu2 %v909_v31 }
  0x3d   : > { %867 = vmatpush.msra.mxu0 %v843_v4  ;;  %v841_v8 = vld [vmem:[%s3240_s4 + $0x8] sm:$0xff]  ;;  %v840_v10 = vld [vmem:[%s3240_s4] sm:$0xff]  ;;  %2438 = vmatmul.msk.f32.vlgmr.msra.gmra.mxu2 %vm848_vm1, %v2914_v9  ;;  %v2458_v45 = vld [vmem:[%s3239_s21 + $0x38] sm:$0xff] }
  0x3e   : > { %899 = vmatpush.msra.mxu1 %v880_v3  ;;  %v2921_v11 = vld [vmem:[#allocation2 + $0x8] sm:$0xff]  ;;  %v2588_v13 = vld [vmem:[%s3241_s3] ss:$0 sm:$0xff]  ;;  %v2457_v46 = vld [vmem:[%s3239_s21 + $0x30] sm:$0xff] }
  0x3f   : > { %868 = vmatpush.msra.mxu0 %v842_v5  ;;  %v2451_v47 = vld [vmem:[%s3240_s4 + $0x38] sm:$0xff]  ;;  %v2456_v48 = vld [vmem:[%s3239_s21 + $0x28] sm:$0xff]  ;;  %v2450_v49 = vld [vmem:[%s3240_s4 + $0x30] sm:$0xff] }
  0x40   : > { %900 = vmatpush.msra.mxu1 %v879_v6  ;;  %1143 = vmatpush.msrb.mxu2 %v2451_v47  ;;  %v2455_v51 = vld [vmem:[%s3239_s21 + $0x20] sm:$0xff]  ;;  %v2449_v53 = vld [vmem:[%s3240_s4 + $0x28] sm:$0xff] }
  0x41   : > { %869 = vmatpush.msra.mxu0 %v841_v8  ;;  %v2448_v54 = vld [vmem:[%s3240_s4 + $0x20] sm:$0xff] }
  0x42   : > { %901 = vmatpush.msra.mxu1 %v878_v7  ;;  %1144 = vmatpush.msrb.mxu2 %v2450_v49 }
  0x43   : > { %870 = vmatpush.msra.mxu0 %v840_v10  ;;  %2436 = vmatmul.msk.f32.vlgmr.msra.gmra.mxu1 %vm848_vm1, %v2914_v9 }
  0x44   : > { %2434 = vmatmul.msk.f32.vlgmr.msra.gmra.mxu0 %vm848_vm1, %v2914_v9  ;;  %1145 = vmatpush.msrb.mxu2 %v2449_v53 }
  0x45   : > { %2439 = vmatmul.msk.f32.gmra.mxu2 %vm848_vm1, %v2921_v11  ;;  %1111 = vmatpush.msrb.mxu1 %v1089_v56  ;;  %v2487_v56 = vld [vmem:[%s3239_s21 + $0x50] sm:$0xff] }
  0x46   : > { %1146 = vmatpush.msrb.mxu2 %v2448_v54 }
  0x4b   : > { %2437 = vmatmul.msk.f32.gmra.mxu1 %vm848_vm1, %v2921_v11 }
  0x4c   : > { %2435 = vmatmul.msk.f32.gmra.mxu0 %vm848_vm1, %v2921_v11 }
  0x4d   : > { %2453 = vmatmul.msk.f32.vlgmr.msrb.gmra.mxu2 %vm848_vm1, %v2914_v9 }
  0x55   : > { %2454 = vmatmul.msk.f32.gmra.mxu2 %vm848_vm1, %v2921_v11 }
  0xc0   : > { %v903_v14 = vpop.f32.mrf.mxu1  ;;  %v934_v43 = vpop.f32.mrf.mxu2 }
  0xc1   : > { %v872_v15 = vpop.f32.mrf.mxu0  ;;  %v904_v16 = vadd.f32 %v2587_v12, %v903_v14  ;;  %v935_v44 = vadd.f32 %v2589_v42, %v934_v43 }
  0xc2   : > { %v873_v17 = vadd.f32 %v2588_v13, %v872_v15 }
  0xc3   : > { %2440 = vmatpush.xpose.msk.msra.mxu3 %vm940_vm2, %v904_v16 }
  0xc6   : > { %2441 = vmatmul.msk.f32.vlgmr.msra.gmra.mxu3 %vm940_vm2, %v873_v17 }
  0xc8   : > { %v906_v18 = vpop.f32.mrf.mxu1  ;;  %v937_v50 = vpop.f32.mrf.mxu2 }
  0xc9   : > { %v875_v19 = vpop.f32.mrf.mxu0  ;;  %v907_v20 = vadd.f32 %v2587_v12, %v906_v18  ;;  %v938_v52 = vadd.f32 %v2589_v42, %v937_v50 }
  0xca   : > { %v876_v21 = vadd.f32 %v2588_v13, %v875_v19  ;;  %v2590_v19 = vld [vmem:[%s2843_s24 + $0x1] ss:$0 sm:$0xff] }
  0xcb   : > { %2442 = vmatpush.xpose.msk.msrb.mxu3 %vm940_vm2, %v907_v20  ;;  %1084 = vmatpush.msrb.mxu0 %v938_v52  ;;  %v2593_v52 = vld [vmem:[%s2853_s2 + $0x1] ss:$0 sm:$0xff] }
  0xce   : > { %2443 = vmatmul.msk.f32.vlgmr.msrb.gmra.mxu3 %vm940_vm2, %v876_v21 }
  0xcf   : > { %1061 = vmatpush.msra.mxu3 %v935_v44 }
  0xd0   : > { %v1148_v20 = vpop.f32.mrf.mxu2 }
  0xd1   : > { %1176 = vmatpush.msrb.mxu3 %v2458_v45 }
  0xd3   : > { %1177 = vmatpush.msrb.mxu3 %v2457_v46 }
  0xd5   : > { %1178 = vmatpush.msrb.mxu3 %v2456_v48 }
  0xd7   : > { %1179 = vmatpush.msrb.mxu3 %v2455_v51 }
 0x149   : > { %v964_v22 = vpop.f32.mrf.mxu3 }
 0x14a   : > { %v993_v23 = vmul.f32 0.35355338, %v964_v22 }
 0x14c   : > { %v995_v24 = vsel %vm940_vm2, %v993_v23, -inf }
 0x14d   : > { %996 = vmax.xlane.f32.xlu0 %v995_v24  ;;  %v2591_v24 = vld [vmem:[%s3241_s3 + $0x1] ss:$0 sm:$0xff] }
 0x151   : > { %v990_v25 = vpop.f32.mrf.mxu3 }
 0x152   : > { %v994_v26 = vmul.f32 0.35355338, %v990_v25  ;;  %v1149_v25 = vadd.f32 %v2591_v24, %v1148_v20 }
 0x154   : > { %v998_v27 = vsel %vm940_vm2, %v994_v26, -inf }
 0x155   : > { %999 = vmax.xlane.f32.xlu0 %v998_v27 }
 0x1c0   : > { %v997_v32 = vpop.xlane.xlu0 %996 }
 0x1c1   : > { %v1001_v33 = vsub.f32 %v993_v23, %v997_v32 }
 0x1c3   : > { %v1003_v34 = vmul.f32 1.442695, %v1001_v33 }
 0x1c5   : > { %2606 = vpow2.f32 %v1003_v34 }
 0x1c8   : > { %v1000_v35 = vpop.xlane.xlu0 %999 }
 0x1c9   : > { %v1002_v36 = vsub.f32 %v994_v26, %v1000_v35  ;;  %v1151_v26 = vpop.f32.mrf.mxu2 }
 0x1ca   : > { %v1152_v29 = vadd.f32 %v2591_v24, %v1151_v26 }
 0x1cb   : > { %v2607_v37 = vpop.eup %2606  ;;  %v1005_v38 = vmul.f32 1.442695, %v1002_v36 }
 0x1cc   : > { %v1007_v39 = vsel %vm940_vm2, %v2607_v37, 0.0 }
 0x1cd   : > { %2608 = vpow2.f32 %v1005_v38  ;;  %1008 = vadd.xlane.f32.xlu1 %v1007_v39  ;;  %v2465_v38 = vld [vmem:[%s2848_s1 + $0x38] sm:$0xff]  ;;  %v2464_v39 = vld [vmem:[%s2848_s1 + $0x30] sm:$0xff] }
 0x1ce   : > { %1209 = vmatpush.msra.mxu0 %v2465_v38 }
 0x1d0   : > { %1210 = vmatpush.msra.mxu0 %v2464_v39 }
 0x1d3   : > { %v2944_v40 = vpop.eup %2608 }
 0x1d4   : > { %v1010_v41 = vsel %vm940_vm2, %v2944_v40, 0.0 }
 0x1d5   : > { %1011 = vadd.xlane.f32.xlu1 %v1010_v41  ;;  %v2462_v41 = vld [vmem:[%s2848_s1 + $0x20] sm:$0xff] }
 0x240   : > { %v1009_v55 = vpop.xlane.xlu1 %1008 }
 0x241   : > { %2610 = vrcp.f32 %v1009_v55  ;;  %v1024_v61 = vand.u32 2147483648, %v1009_v55  ;;  %v1022_v63 = vand.u32 2147483647, %v1009_v55  ;;  %vm1018_vm4 = vweird.f32 %v1009_v55 }
 0x243   : > { %v1025_v2 = vor.u32 1.1754944e-38, %v1024_v61  ;;  %vm1023_vm6 = vcmp.eq.f32.partialorder %v1022_v63, 8.507059e+37  ;;  %v2478_v63 = vld [vmem:[%s3240_s4 + $0x40] sm:$0xff] }
 0x247   : > { %v2611_v57 = vpop.eup %2610 }
 0x248   : > { %v1014_v58 = vmul.f32 %v2611_v57, %v1009_v55  ;;  %v1012_v59 = vpop.xlane.xlu1 %1011  ;;  %vm1019_vm3 = vweird.f32 %v2611_v57  ;;  %v2488_v55 = vld [vmem:[%s3239_s21 + $0x58] sm:$0xff] }
 0x249   : > { %2612 = vrcp.f32 %v1012_v59  ;;  %vm1020_vm5 = vmor %vm1018_vm4, %vm1019_vm3  ;;  %v1038_v8 = vand.u32 2147483648, %v1012_v59  ;;  %v1036_v12 = vand.u32 2147483647, %v1012_v59  ;;  %vm1032_vm8 = vweird.f32 %v1012_v59 }
 0x24a   : > { %v1015_v60 = vsub.f32 1.0, %v1014_v58  ;;  %v2486_v58 = vld [vmem:[%s3239_s21 + $0x48] sm:$0xff] }
 0x24b   : > { %v1039_v14 = vor.u32 1.1754944e-38, %v1038_v8  ;;  %vm1037_vm10 = vcmp.eq.f32.partialorder %v1036_v12, 8.507059e+37 }
 0x24c   : > { %v1016_v62 = vmul.f32 %v2611_v57, %v1015_v60  ;;  %v2485_v60 = vld [vmem:[%s3239_s21 + $0x40] sm:$0xff] }
 0x24e   : > { %v1017_v0 = vadd.f32 %v2611_v57, %v1016_v62  ;;  %v2479_v62 = vld [vmem:[%s3240_s4 + $0x48] sm:$0xff] }
 0x24f   : > { %v2613_v1 = vpop.eup %2612 }
 0x250   : > { %v1021_v3 = vsel %vm1020_vm5, %v2611_v57, %v1017_v0  ;;  %v1028_v4 = vmul.f32 %v2613_v1, %v1012_v59  ;;  %vm1033_vm7 = vweird.f32 %v2613_v1  ;;  %v2481_v57 = vld [vmem:[%s3240_s4 + $0x58] sm:$0xff]  ;;  %v2480_v59 = vld [vmem:[%s3240_s4 + $0x50] sm:$0xff] }
 0x251   : > { %v1026_v5 = vsel %vm1023_vm6, %v1025_v2, %v1021_v3  ;;  %vm1034_vm9 = vmor %vm1032_vm8, %vm1033_vm7 }
 0x252   : > { %v1029_v6 = vsub.f32 1.0, %v1028_v4  ;;  %v1041_v7 = vmul.f32 %v2607_v37, %v1026_v5 }
 0x254   : > { %v1030_v10 = vmul.f32 %v2613_v1, %v1029_v6  ;;  %2444 = vmatmul.msk.f32.vlgmr.msra.gmra.mxu3 %vm940_vm2, %v1041_v7 }
 0x256   : > { %v1031_v13 = vadd.f32 %v2613_v1, %v1030_v10 }
 0x258   : > { %v1035_v15 = vsel %vm1034_vm9, %v2613_v1, %v1031_v13 }
 0x259   : > { %v1040_v16 = vsel %vm1037_vm10, %v1039_v14, %v1035_v15 }
 0x25a   : > { %v1042_v17 = vmul.f32 %v2944_v40, %v1040_v16  ;;  %v2463_v40 = vld [vmem:[%s2848_s1 + $0x28] sm:$0xff] }
 0x25b   : > { %1211 = vmatpush.msra.mxu0 %v2463_v40 }
 0x25c   : > { %2445 = vmatmul.msk.f32.vlgmr.msrb.gmra.mxu0 %vm940_vm2, %v1042_v17  ;;  %2460 = vmatmul.msk.f32.vlgmr.msrb.gmra.mxu3 %vm848_vm1, %v2914_v9 }
 0x25d   : > { %1212 = vmatpush.msra.mxu0 %v2462_v41 }
 0x264   : > { %2461 = vmatmul.msk.f32.gmra.mxu3 %vm848_vm1, %v2921_v11  ;;  %2467 = vmatmul.msk.f32.vlgmr.msra.gmra.mxu0 %vm848_vm1, %v2914_v9 }
 0x26c   : > { %2468 = vmatmul.msk.f32.gmra.mxu0 %vm848_vm1, %v2921_v11 }
 0x2d7   : > { %v1063_v18 = vpop.f32.mrf.mxu3 }
 0x2d8   : > { %2446 = vmatmul.msk.f32.vlgmr.msrb.gmra.mxu1 %vm940_vm2, %v1063_v18 }
 0x2d9   : > { %v1086_v21 = vpop.f32.mrf.mxu0 }
 0x2df   : > { %v1181_v22 = vpop.f32.mrf.mxu3 }
 0x2e0   : > { %v1182_v23 = vadd.f32 %v2590_v19, %v1181_v22  ;;  %2447 = vmatmul.msk.f32.gmra.mxu1 %vm940_vm2, %v1086_v21 }
 0x2e1   : > { %v1214_v53 = vpop.f32.mrf.mxu0 }
 0x2e2   : > { %2469 = vmatpush.xpose.msk.msra.mxu1 %vm940_vm2, %v1182_v23  ;;  %v1215_v54 = vadd.f32 %v2593_v52, %v1214_v53 }
 0x2e4   : > { %1340 = vmatpush.msra.mxu3 %v1215_v54  ;;  %v2495_v54 = vld [vmem:[%s2848_s1 + $0x58] sm:$0xff] }
 0x2e6   : > { %1456 = vmatpush.msrb.mxu3 %v2488_v55  ;;  %v2494_v55 = vld [vmem:[%s2848_s1 + $0x50] sm:$0xff] }
 0x2e7   : > { %v1184_v27 = vpop.f32.mrf.mxu3 }
 0x2e8   : > { %v1185_v28 = vadd.f32 %v2590_v19, %v1184_v27  ;;  %2470 = vmatmul.msk.f32.vlgmr.msra.gmra.mxu1 %vm940_vm2, %v1149_v25  ;;  %1457 = vmatpush.msrb.mxu3 %v2487_v56  ;;  %v2475_v27 = vld [vmem:[%s2863_s17 + $0x8] sm:$0xff] }
 0x2e9   : > { %v1217_v61 = vpop.f32.mrf.mxu0  ;;  %1391 = vmatpush.msrb.mxu1 %v2475_v27  ;;  %v2493_v56 = vld [vmem:[%s2848_s1 + $0x48] sm:$0xff] }
 0x2ea   : > { %2471 = vmatpush.xpose.msk.msra.mxu2 %vm940_vm2, %v1185_v28  ;;  %1458 = vmatpush.msrb.mxu3 %v2486_v58  ;;  %v1218_v0 = vadd.f32 %v2593_v52, %v1217_v61 }
 0x2ec   : > { %1459 = vmatpush.msrb.mxu3 %v2485_v60  ;;  %1363 = vmatpush.msrb.mxu0 %v1218_v0 }
 0x2ed   : > { %2472 = vmatmul.msk.f32.vlgmr.msra.gmra.mxu2 %vm940_vm2, %v1152_v29  ;;  %v2594_v29 = vld [vmem:[%s2843_s24 + $0x2] ss:$0 sm:$0xff] }
 0x2ee   : > { %1423 = vmatpush.msrb.mxu2 %v2481_v57  ;;  %1489 = vmatpush.msra.mxu0 %v2495_v54 }
 0x2f0   : > { %1424 = vmatpush.msrb.mxu2 %v2480_v59  ;;  %1490 = vmatpush.msra.mxu0 %v2494_v55 }
 0x2f2   : > { %1425 = vmatpush.msrb.mxu2 %v2479_v62  ;;  %1491 = vmatpush.msra.mxu0 %v2493_v56 }
 0x2f4   : > { %1426 = vmatpush.msrb.mxu2 %v2478_v63 }
 0x2f5   : > { %2483 = vmatmul.msk.f32.vlgmr.msrb.gmra.mxu2 %vm848_vm1, %v2914_v9 }
 0x2fd   : > { %2484 = vmatmul.msk.f32.gmra.mxu2 %vm848_vm1, %v2921_v11 }
 0x355   : > { %v2977_v30 = vpop.f32.mrf.mxu1 }
 0x35d   : > { %v2979_v31 = vpop.f32.mrf.mxu1 }
 0x365   : > { %v1243_v32 = vpop.f32.mrf.mxu1 }
 0x366   : > { %v1272_v33 = vmul.f32 0.35355338, %v1243_v32 }
 0x368   : > { %v1274_v34 = vsel %vm940_vm2, %v1272_v33, -inf }
 0x369   : > { %1275 = vmax.xlane.f32.xlu2 %v1274_v34 }
 0x370   : > { %v1269_v35 = vpop.f32.mrf.mxu2 }
 0x371   : > { %v1273_v36 = vmul.f32 0.35355338, %v1269_v35 }
 0x373   : > { %v1277_v37 = vsel %vm940_vm2, %v1273_v36, -inf }
 0x374   : > { %1278 = vmax.xlane.f32.xlu2 %v1277_v37 }
 0x378   : > { %v1428_v32 = vpop.f32.mrf.mxu2 }
 0x380   : > { %v1431_v38 = vpop.f32.mrf.mxu2 }
 0x3dc   : > { %v1276_v42 = vpop.xlane.xlu2 %1275 }
 0x3dd   : > { %v1280_v43 = vsub.f32 %v1272_v33, %v1276_v42  ;;  %v2592_v42 = vld [vmem:[%s3242_s23] ss:$0 sm:$0xff] }
 0x3df   : > { %v1282_v44 = vmul.f32 1.442695, %v1280_v43  ;;  %v1119_v43 = vadd.f32 %v2592_v42, %v2977_v30 }
 0x3e1   : > { %2614 = vpow2.f32 %v1282_v44 }
 0x3e7   : > { %v2615_v45 = vpop.eup %2614  ;;  %v1279_v46 = vpop.xlane.xlu2 %1278 }
 0x3e8   : > { %v1281_v47 = vsub.f32 %v1273_v36, %v1279_v46  ;;  %v1286_v48 = vsel %vm940_vm2, %v2615_v45, 0.0  ;;  %v2595_v36 = vld [vmem:[%s3241_s3 + $0x2] ss:$0 sm:$0xff]  ;;  %v1120_v46 = vadd.f32 %v2592_v42, %v2979_v31 }
 0x3e9   : > { %1287 = vadd.xlane.f32.xlu0 %v1286_v48  ;;  %v1429_v37 = vadd.f32 %v2595_v36, %v1428_v32  ;;  %v1432_v41 = vadd.f32 %v2595_v36, %v1431_v38  ;;  %v2492_v31 = vld [vmem:[%s2848_s1 + $0x40] sm:$0xff] }
 0x3ea   : > { %v1284_v49 = vmul.f32 1.442695, %v1281_v47  ;;  %1492 = vmatpush.msra.mxu0 %v2492_v31 }
 0x3ec   : > { %2616 = vpow2.f32 %v1284_v49 }
 0x3f2   : > { %v2992_v50 = vpop.eup %2616 }
 0x3f3   : > { %v1289_v51 = vsel %vm940_vm2, %v2992_v50, 0.0 }
 0x3f4   : > { %1290 = vadd.xlane.f32.xlu1 %v1289_v51 }
 0x45c   : > { %v1288_v1 = vpop.xlane.xlu0 %1287 }
 0x45d   : > { %2618 = vrcp.f32 %v1288_v1  ;;  %v1303_v5 = vand.u32 2147483648, %v1288_v1  ;;  %v1301_v8 = vand.u32 2147483647, %v1288_v1  ;;  %vm1297_vm12 = vweird.f32 %v1288_v1 }
 0x45f   : > { %v1304_v12 = vor.u32 1.1754944e-38, %v1303_v5  ;;  %vm1302_vm14 = vcmp.eq.f32.partialorder %v1301_v8, 8.507059e+37  ;;  %v2511_v8 = vld [vmem:[%s3240_s4 + $0x78] sm:$0xff] }
 0x463   : > { %v2619_v2 = vpop.eup %2618 }
 0x464   : > { %v1293_v3 = vmul.f32 %v2619_v2, %v1288_v1  ;;  %vm1298_vm11 = vweird.f32 %v2619_v2 }
 0x465   : > { %vm1299_vm13 = vmor %vm1297_vm12, %vm1298_vm11 }
 0x466   : > { %v1294_v4 = vsub.f32 1.0, %v1293_v3  ;;  %v2596_v3 = vld [vmem:[%s2853_s2 + $0x2] ss:$0 sm:$0xff] }
 0x467   : > { %v1291_v6 = vpop.xlane.xlu1 %1290 }
 0x468   : > { %v1295_v7 = vmul.f32 %v2619_v2, %v1294_v4  ;;  %2620 = vrcp.f32 %v1291_v6  ;;  %v1317_v19 = vand.u32 2147483648, %v1291_v6  ;;  %v1315_v21 = vand.u32 2147483647, %v1291_v6 }
 0x469   : > { %vm1311_vm0 = vweird.f32 %v1291_v6 }
 0x46a   : > { %v1296_v10 = vadd.f32 %v2619_v2, %v1295_v7  ;;  %v1318_v23 = vor.u32 1.1754944e-38, %v1317_v19  ;;  %vm1316_vm4 = vcmp.eq.f32.partialorder %v1315_v21, 8.507059e+37  ;;  %v2517_v7 = vld [vmem:[%s3239_s21 + $0x70] sm:$0xff] }
 0x46c   : > { %v1300_v13 = vsel %vm1299_vm13, %v2619_v2, %v1296_v10  ;;  %v2516_v10 = vld [vmem:[%s3239_s21 + $0x68] sm:$0xff] }
 0x46d   : > { %v1305_v14 = vsel %vm1302_vm14, %v1304_v12, %v1300_v13  ;;  %v2510_v12 = vld [vmem:[%s3240_s4 + $0x70] sm:$0xff]  ;;  %v2515_v13 = vld [vmem:[%s3239_s21 + $0x60] sm:$0xff] }
 0x46e   : > { %v2621_v15 = vpop.eup %2620  ;;  %v1320_v16 = vmul.f32 %v2615_v45, %v1305_v14 }
 0x46f   : > { %v1307_v17 = vmul.f32 %v2621_v15, %v1291_v6  ;;  %vm1312_vm15 = vweird.f32 %v2621_v15  ;;  %v2518_v6 = vld [vmem:[%s3239_s21 + $0x78] sm:$0xff] }
 0x470   : > { %2473 = vmatmul.msk.f32.vlgmr.msra.gmra.mxu3 %vm940_vm2, %v1320_v16  ;;  %vm1313_vm3 = vmor %vm1311_vm0, %vm1312_vm15  ;;  %v2508_v16 = vld [vmem:[%s3240_s4 + $0x60] sm:$0xff] }
 0x471   : > { %v1308_v18 = vsub.f32 1.0, %v1307_v17 }
 0x473   : > { %v1309_v20 = vmul.f32 %v2621_v15, %v1308_v18 }
 0x475   : > { %v1310_v22 = vadd.f32 %v2621_v15, %v1309_v20 }
 0x477   : > { %v1314_v24 = vsel %vm1313_vm3, %v2621_v15, %v1310_v22  ;;  %v2509_v15 = vld [vmem:[%s3240_s4 + $0x68] sm:$0xff] }
 0x478   : > { %v1319_v25 = vsel %vm1316_vm4, %v1318_v23, %v1314_v24  ;;  %2490 = vmatmul.msk.f32.vlgmr.msrb.gmra.mxu3 %vm848_vm1, %v2914_v9 }
 0x479   : > { %v1321_v26 = vmul.f32 %v2992_v50, %v1319_v25 }
 0x47b   : > { %2474 = vmatmul.msk.f32.vlgmr.msrb.gmra.mxu0 %vm940_vm2, %v1321_v26 }
 0x480   : > { %2491 = vmatmul.msk.f32.gmra.mxu3 %vm848_vm1, %v2921_v11 }
 0x483   : > { %2497 = vmatmul.msk.f32.vlgmr.msra.gmra.mxu0 %vm848_vm1, %v2914_v9 }
 0x48b   : > { %2498 = vmatmul.msk.f32.gmra.mxu0 %vm848_vm1, %v2921_v11 }
 0x4f3   : > { %v1342_v28 = vpop.f32.mrf.mxu3 }
 0x4f4   : > { %2476 = vmatmul.msk.f32.vlgmr.msrb.gmra.mxu1 %vm940_vm2, %v1342_v28 }
 0x4f8   : > { %v1365_v33 = vpop.f32.mrf.mxu0 }
 0x4fb   : > { %v1461_v34 = vpop.f32.mrf.mxu3 }
 0x4fc   : > { %v1462_v35 = vadd.f32 %v2594_v29, %v1461_v34  ;;  %2477 = vmatmul.msk.f32.gmra.mxu1 %vm940_vm2, %v1365_v33 }
 0x4fe   : > { %2499 = vmatpush.xpose.msk.msra.mxu1 %vm940_vm2, %v1462_v35 }
 0x500   : > { %v1494_v4 = vpop.f32.mrf.mxu0 }
 0x501   : > { %v1495_v5 = vadd.f32 %v2596_v3, %v1494_v4  ;;  %v2524_v4 = vld [vmem:[%s2848_s1 + $0x70] sm:$0xff] }
 0x503   : > { %v1464_v39 = vpop.f32.mrf.mxu3  ;;  %1620 = vmatpush.msra.mxu3 %v1495_v5  ;;  %v2522_v5 = vld [vmem:[%s2848_s1 + $0x60] sm:$0xff] }
 0x504   : > { %v1465_v40 = vadd.f32 %v2594_v29, %v1464_v39  ;;  %2500 = vmatmul.msk.f32.vlgmr.msra.gmra.mxu1 %vm940_vm2, %v1429_v37 }
 0x505   : > { %1736 = vmatpush.msrb.mxu3 %v2518_v6 }
 0x506   : > { %2501 = vmatpush.xpose.msk.msra.mxu2 %vm940_vm2, %v1465_v40 }
 0x507   : > { %1737 = vmatpush.msrb.mxu3 %v2517_v7 }
 0x508   : > { %v1497_v14 = vpop.f32.mrf.mxu0 }
 0x509   : > { %2502 = vmatmul.msk.f32.vlgmr.msra.gmra.mxu2 %vm940_vm2, %v1432_v41  ;;  %1738 = vmatpush.msrb.mxu3 %v2516_v10  ;;  %v1498_v17 = vadd.f32 %v2596_v3, %v1497_v14  ;;  %v2525_v3 = vld [vmem:[%s2848_s1 + $0x78] sm:$0xff] }
 0x50a   : > { %1703 = vmatpush.msrb.mxu2 %v2511_v8 }
 0x50b   : > { %1739 = vmatpush.msrb.mxu3 %v2515_v13  ;;  %1643 = vmatpush.msrb.mxu0 %v1498_v17  ;;  %v2599_v17 = vld [vmem:[%s2853_s2 + $0x3] ss:$0 sm:$0xff] }
 0x50c   : > { %1704 = vmatpush.msrb.mxu2 %v2510_v12 }
 0x50d   : > { %1769 = vmatpush.msra.mxu0 %v2525_v3 }
 0x50e   : > { %1705 = vmatpush.msrb.mxu2 %v2509_v15 }
 0x50f   : > { %1770 = vmatpush.msra.mxu0 %v2524_v4 }
 0x510   : > { %1706 = vmatpush.msrb.mxu2 %v2508_v16 }
 0x511   : > { %2513 = vmatmul.msk.f32.vlgmr.msrb.gmra.mxu2 %vm848_vm1, %v2914_v9 }
 0x519   : > { %2514 = vmatmul.msk.f32.gmra.mxu2 %vm848_vm1, %v2921_v11 }
 0x571   : > { %v1393_v44 = vpop.f32.mrf.mxu1 }
 0x572   : > { %v3031_v45 = vadd.f32 %v1393_v44, %v1119_v43  ;;  %v2505_v44 = vld [vmem:[%s2863_s17 + $0x10] sm:$0xff] }
 0x573   : > { %1671 = vmatpush.msrb.mxu1 %v2505_v44 }
 0x579   : > { %v1396_v47 = vpop.f32.mrf.mxu1 }
 0x57a   : > { %v3034_v48 = vadd.f32 %v1396_v47, %v1120_v46  ;;  %v2597_v47 = vld [vmem:[%s2843_s24 + $0x3] ss:$0 sm:$0xff]  ;;  %s3243_s24 = scalar_lea.vmem %s3198_s9, %s2821_s29  ;;  %s3246_s29 = sld [smem:[#allocation6_spill]] }
 0x580   : > { %p2542_p6 = scmp.ne.s32.totalorder %s3246_s29, 1 }
 0x581   : > { %v1523_v49 = vpop.f32.mrf.mxu1 }
 0x582   : > { %v1552_v50 = vmul.f32 0.35355338, %v1523_v49 }
 0x584   : > { %v1554_v51 = vsel %vm940_vm2, %v1552_v50, -inf }
 0x585   : > { %1555 = vmax.xlane.f32.xlu2 %v1554_v51 }
 0x58c   : > { %v1549_v52 = vpop.f32.mrf.mxu2 }
 0x58d   : > { %v1553_v53 = vmul.f32 0.35355338, %v1549_v52 }
 0x58f   : > { %v1557_v30 = vsel %vm940_vm2, %v1553_v53, -inf }
 0x590   : > { %1558 = vmax.xlane.f32.xlu0 %v1557_v30 }
 0x594   : > { %v1708_v49 = vpop.f32.mrf.mxu2 }
 0x59c   : > { %v1711_v54 = vpop.f32.mrf.mxu2 }
 0x5f8   : > { %v1556_v57 = vpop.xlane.xlu2 %1555 }
 0x5f9   : > { %v1560_v58 = vsub.f32 %v1552_v50, %v1556_v57 }
 0x5fb   : > { %v1562_v59 = vmul.f32 1.442695, %v1560_v58 }
 0x5fd   : > { %2622 = vpow2.f32 %v1562_v59 }
 0x603   : > { %v2623_v60 = vpop.eup %2622  ;;  %v1559_v61 = vpop.xlane.xlu0 %1558 }
 0x604   : > { %v1561_v62 = vsub.f32 %v1553_v53, %v1559_v61  ;;  %v1566_v63 = vsel %vm940_vm2, %v2623_v60, 0.0  ;;  %v2598_v53 = vld [vmem:[%s3241_s3 + $0x3] ss:$0 sm:$0xff] }
 0x605   : > { %1567 = vadd.xlane.f32.xlu1 %v1566_v63  ;;  %v1709_v30 = vadd.f32 %v2598_v53, %v1708_v49  ;;  %v1712_v31 = vadd.f32 %v2598_v53, %v1711_v54 }
 0x606   : > { %v1564_v0 = vmul.f32 1.442695, %v1561_v62 }
 0x608   : > { %2624 = vpow2.f32 %v1564_v0 }
 0x60e   : > { %v3047_v1 = vpop.eup %2624 }
 0x60f   : > { %v1569_v2 = vsel %vm940_vm2, %v3047_v1, 0.0 }
 0x610   : > { %1570 = vadd.xlane.f32.xlu2 %v1569_v2 }
 0x678   : > { %v1568_v18 = vpop.xlane.xlu1 %1567 }
 0x679   : > { %2626 = vrcp.f32 %v1568_v18  ;;  %v1583_v22 = vand.u32 2147483648, %v1568_v18  ;;  %v1581_v25 = vand.u32 2147483647, %v1568_v18  ;;  %vm1577_vm6 = vweird.f32 %v1568_v18 }
 0x67b   : > { %v1584_v27 = vor.u32 1.1754944e-38, %v1583_v22  ;;  %vm1582_vm8 = vcmp.eq.f32.partialorder %v1581_v25, 8.507059e+37 }
 0x67f   : > { %v2627_v19 = vpop.eup %2626 }
 0x680   : > { %v1573_v20 = vmul.f32 %v2627_v19, %v1568_v18  ;;  %vm1578_vm5 = vweird.f32 %v2627_v19 }
 0x681   : > { %vm1579_vm7 = vmor %vm1577_vm6, %vm1578_vm5 }
 0x682   : > { %v1574_v21 = vsub.f32 1.0, %v1573_v20 }
 0x683   : > { %v1571_v23 = vpop.xlane.xlu2 %1570 }
 0x684   : > { %v1575_v24 = vmul.f32 %v2627_v19, %v1574_v21  ;;  %2628 = vrcp.f32 %v1571_v23  ;;  %v1597_v36 = vand.u32 2147483648, %v1571_v23  ;;  %v1595_v38 = vand.u32 2147483647, %v1571_v23 }
 0x685   : > { %vm1591_vm10 = vweird.f32 %v1571_v23 }
 0x686   : > { %v1576_v26 = vadd.f32 %v2627_v19, %v1575_v24  ;;  %v1598_v40 = vor.u32 1.1754944e-38, %v1597_v36  ;;  %vm1596_vm12 = vcmp.eq.f32.partialorder %v1595_v38, 8.507059e+37 }
 0x688   : > { %v1580_v28 = vsel %vm1579_vm7, %v2627_v19, %v1576_v26 }
 0x689   : > { %v1585_v29 = vsel %vm1582_vm8, %v1584_v27, %v1580_v28 }
 0x68a   : > { %v2629_v32 = vpop.eup %2628  ;;  %v1600_v33 = vmul.f32 %v2623_v60, %v1585_v29 }
 0x68b   : > { %v1587_v34 = vmul.f32 %v2629_v32, %v1571_v23  ;;  %vm1592_vm9 = vweird.f32 %v2629_v32 }
 0x68c   : > { %2503 = vmatmul.msk.f32.vlgmr.msra.gmra.mxu3 %vm940_vm2, %v1600_v33  ;;  %vm1593_vm11 = vmor %vm1591_vm10, %vm1592_vm9 }
 0x68d   : > { %v1588_v35 = vsub.f32 1.0, %v1587_v34 }
 0x68f   : > { %v1589_v37 = vmul.f32 %v2629_v32, %v1588_v35 }
 0x691   : > { %v1590_v39 = vadd.f32 %v2629_v32, %v1589_v37 }
 0x693   : > { %v1594_v41 = vsel %vm1593_vm11, %v2629_v32, %v1590_v39 }
 0x694   : > { %v1599_v42 = vsel %vm1596_vm12, %v1598_v40, %v1594_v41  ;;  %2520 = vmatmul.msk.f32.vlgmr.msrb.gmra.mxu3 %vm848_vm1, %v2914_v9 }
 0x695   : > { %v1601_v43 = vmul.f32 %v3047_v1, %v1599_v42 }
 0x697   : > { %2504 = vmatmul.msk.f32.vlgmr.msrb.gmra.mxu0 %vm940_vm2, %v1601_v43 }
 0x69c   : > { %2521 = vmatmul.msk.f32.gmra.mxu3 %vm848_vm1, %v2921_v11 }
 0x70f   : > { %v1622_v46 = vpop.f32.mrf.mxu3 }
 0x710   : > { %2506 = vmatmul.msk.f32.vlgmr.msrb.gmra.mxu1 %vm940_vm2, %v1622_v46 }
 0x714   : > { %v1645_v50 = vpop.f32.mrf.mxu0 }
 0x717   : > { %v1741_v51 = vpop.f32.mrf.mxu3 }
 0x718   : > { %v1742_v52 = vadd.f32 %v2597_v47, %v1741_v51  ;;  %2507 = vmatmul.msk.f32.gmra.mxu1 %vm940_vm2, %v1645_v50  ;;  %v2535_v50 = vld [vmem:[%s2863_s17 + $0x18] sm:$0xff] }
 0x71a   : > { %2529 = vmatpush.xpose.msk.msra.mxu1 %vm940_vm2, %v1742_v52 }
 0x71e   : > { %1951 = vmatpush.msrb.mxu1 %v2535_v50 }
 0x71f   : > { %v1744_v55 = vpop.f32.mrf.mxu3 }
 0x720   : > { %v1745_v56 = vadd.f32 %v2597_v47, %v1744_v55  ;;  %2530 = vmatmul.msk.f32.vlgmr.msra.gmra.mxu1 %vm940_vm2, %v1709_v30 }
 0x722   : > { %2531 = vmatpush.xpose.msk.msra.mxu2 %vm940_vm2, %v1745_v56 }
 0x725   : > { %2532 = vmatmul.msk.f32.vlgmr.msra.gmra.mxu2 %vm940_vm2, %v1712_v31 }
 0x78d   : > { %v1673_v57 = vpop.f32.mrf.mxu1 }
 0x78e   : > { %v3081_v58 = vadd.f32 %v1673_v57, %v3031_v45  ;;  %v2523_v45 = vld [vmem:[%s2848_s1 + $0x68] sm:$0xff] }
 0x78f   : > { %1771 = vmatpush.msra.mxu0 %v2523_v45 }
 0x791   : > { %1772 = vmatpush.msra.mxu0 %v2522_v5 }
 0x792   : > { %2527 = vmatmul.msk.f32.vlgmr.msra.gmra.mxu0 %vm848_vm1, %v2914_v9 }
 0x795   : > { %v1676_v59 = vpop.f32.mrf.mxu1 }
 0x796   : > { %v3084_v60 = vadd.f32 %v1676_v59, %v3034_v48 }
 0x79a   : > { %2528 = vmatmul.msk.f32.gmra.mxu0 %vm848_vm1, %v2921_v11 }
 0x79d   : > { %v1803_v61 = vpop.f32.mrf.mxu1 }
 0x79e   : > { %v1832_v62 = vmul.f32 0.35355338, %v1803_v61  ;;  %v2704_v61 = vmov 32.0  }
 0x7a0   : > { %v1834_v63 = vsel %vm940_vm2, %v1832_v62, -inf }
 0x7a1   : > { %1835 = vmax.xlane.f32.xlu0 %v1834_v63 }
 0x7a8   : > { %v1829_v0 = vpop.f32.mrf.mxu2 }
 0x7a9   : > { %v1833_v1 = vmul.f32 0.35355338, %v1829_v0 }
 0x7ab   : > { %v1837_v2 = vsel %vm940_vm2, %v1833_v1, -inf }
 0x7ac   : > { %1838 = vmax.xlane.f32.xlu1 %v1837_v2 }
 0x80f   : > { %v1774_v18 = vpop.f32.mrf.mxu0 }
 0x810   : > { %v1775_v19 = vadd.f32 %v2599_v17, %v1774_v18  ;;  %v2071_v18 = vld [vmem:[%s2886_s7 + $0x30] sm:$0xff] }
 0x812   : > { %1900 = vmatpush.msrb.mxu0 %v1775_v19  ;;  %v2070_v19 = vld [vmem:[%s2886_s7 + $0x28] sm:$0xff] }
 0x814   : > { %v1836_v48 = vpop.xlane.xlu0 %1835 }
 0x815   : > { %v1840_v6 = vsub.f32 %v1832_v62, %v1836_v48 }
 0x817   : > { %v1842_v7 = vmul.f32 1.442695, %v1840_v6  ;;  %v1777_v20 = vpop.f32.mrf.mxu0 }
 0x818   : > { %v1778_v21 = vadd.f32 %v2599_v17, %v1777_v20  ;;  %v2072_v17 = vld [vmem:[%s2886_s7 + $0x38] sm:$0xff] }
 0x819   : > { %2630 = vpow2.f32 %v1842_v7  ;;  %2092 = vmatpush.msra.mxu3 %v2072_v17 }
 0x81a   : > { %1923 = vmatpush.msra.mxu0 %v1778_v21 }
 0x81b   : > { %2093 = vmatpush.msra.mxu3 %v2071_v18 }
 0x81d   : > { %2094 = vmatpush.msra.mxu3 %v2070_v19 }
 0x81f   : > { %v2631_v8 = vpop.eup %2630  ;;  %v1839_v10 = vpop.xlane.xlu1 %1838 }
 0x820   : > { %v1841_v12 = vsub.f32 %v1833_v1, %v1839_v10  ;;  %v1846_v13 = vsel %vm940_vm2, %v2631_v8, 0.0  ;;  %v2028_v10 = vld [vmem:[%s2876_s5 + $0x10] sm:$0xff] }
 0x821   : > { %1847 = vadd.xlane.f32.xlu2 %v1846_v13  ;;  %v2026_v13 = vld [vmem:[%s2876_s5] sm:$0xff] }
 0x822   : > { %v1844_v14 = vmul.f32 1.442695, %v1841_v12  ;;  %v2027_v12 = vld [vmem:[%s2876_s5 + $0x8] sm:$0xff] }
 0x824   : > { %2632 = vpow2.f32 %v1844_v14 }
 0x82a   : > { %v2633_v15 = vpop.eup %2632 }
 0x82b   : > { %v1849_v16 = vsel %vm940_vm2, %v2633_v15, 0.0 }
 0x82c   : > { %1850 = vadd.xlane.f32.xlu0 %v1849_v16 }
 0x894   : > { %v1848_v22 = vpop.xlane.xlu2 %1847 }
 0x895   : > { %2634 = vrcp.f32 %v1848_v22  ;;  %v1863_v26 = vand.u32 2147483648, %v1848_v22  ;;  %v1861_v29 = vand.u32 2147483647, %v1848_v22  ;;  %vm1857_vm14 = vweird.f32 %v1848_v22 }
 0x897   : > { %v1864_v33 = vor.u32 1.1754944e-38, %v1863_v26  ;;  %vm1862_vm0 = vcmp.eq.f32.partialorder %v1861_v29, 8.507059e+37 }
 0x89b   : > { %v2635_v23 = vpop.eup %2634 }
 0x89c   : > { %v1853_v24 = vmul.f32 %v2635_v23, %v1848_v22  ;;  %vm1858_vm13 = vweird.f32 %v2635_v23 }
 0x89d   : > { %vm1859_vm15 = vmor %vm1857_vm14, %vm1858_vm13  ;;  %vm2077_vm13 = vcmask 523264  }
 0x89e   : > { %v1854_v25 = vsub.f32 1.0, %v1853_v24  ;;  %v2069_v24 = vld [vmem:[%s2886_s7 + $0x20] sm:$0xff] }
 0x89f   : > { %v1851_v27 = vpop.xlane.xlu0 %1850  ;;  %2095 = vmatpush.msra.mxu3 %v2069_v24 }
 0x8a0   : > { %v1855_v28 = vmul.f32 %v2635_v23, %v1854_v25  ;;  %2636 = vrcp.f32 %v1851_v27  ;;  %v1877_v40 = vand.u32 2147483648, %v1851_v27  ;;  %v1875_v42 = vand.u32 2147483647, %v1851_v27 }
 0x8a1   : > { %vm1871_vm4 = vweird.f32 %v1851_v27  ;;  %2638 = vrcp.f32 %v2704_v61  ;;  %v2603_v61 = vld [vmem:[%s816_s18] ss:$0 sm:$0xff] }
 0x8a2   : > { %v1856_v32 = vadd.f32 %v2635_v23, %v1855_v28  ;;  %v1878_v44 = vor.u32 1.1754944e-38, %v1877_v40  ;;  %vm1876_vm6 = vcmp.eq.f32.partialorder %v1875_v42, 8.507059e+37 }
 0x8a4   : > { %v1860_v34 = vsel %vm1859_vm15, %v2635_v23, %v1856_v32 }
 0x8a5   : > { %v1865_v35 = vsel %vm1862_vm0, %v1864_v33, %v1860_v34  ;;  %v2600_v33 = vld [vmem:[%s3243_s24] ss:$0 sm:$0xff] }
 0x8a6   : > { %v2637_v36 = vpop.eup %2636  ;;  %v1880_v37 = vmul.f32 %v2631_v8, %v1865_v35  ;;  %v2029_v8 = vld [vmem:[%s2876_s5 + $0x18] sm:$0xff] }
 0x8a7   : > { %v1867_v38 = vmul.f32 %v2637_v36, %v1851_v27  ;;  %vm1872_vm3 = vweird.f32 %v2637_v36  ;;  %v2639_v62 = vpop.eup %2638  ;;  %2052 = vmatpush.msrb.mxu2 %v2029_v8  ;;  %v2068_v27 = vld [vmem:[%s2886_s7 + $0x18] sm:$0xff] }
 0x8a8   : > { %2533 = vmatmul.msk.f32.vlgmr.msrb.gmra.mxu0 %vm940_vm2, %v1880_v37  ;;  %vm1873_vm5 = vmor %vm1871_vm4, %vm1872_vm3  ;;  %v1972_v63 = vmul.f32 32.0, %v2639_v62  ;;  %2096 = vmatpush.msra.mxu3 %v2068_v27 }
 0x8a9   : > { %v1868_v39 = vsub.f32 1.0, %v1867_v38  ;;  %2053 = vmatpush.msrb.mxu2 %v2028_v10  ;;  %v2601_v38 = vld [vmem:[%s3244_s22] ss:$0 sm:$0xff] }
 0x8aa   : > { %v1973_v0 = vsub.f32 1.0, %v1972_v63 }
 0x8ab   : > { %v1869_v41 = vmul.f32 %v2637_v36, %v1868_v39  ;;  %2054 = vmatpush.msrb.mxu2 %v2027_v12 }
 0x8ac   : > { %v1974_v1 = vmul.f32 %v2639_v62, %v1973_v0 }
 0x8ad   : > { %v1870_v43 = vadd.f32 %v2637_v36, %v1869_v41  ;;  %2055 = vmatpush.msrb.mxu2 %v2026_v13 }
 0x8af   : > { %v1874_v46 = vsel %vm1873_vm5, %v2637_v36, %v1870_v43 }
 0x8b0   : > { %v1879_v47 = vsel %vm1876_vm6, %v1878_v44, %v1874_v46 }
 0x8b1   : > { %v1881_v49 = vmul.f32 %v2633_v15, %v1879_v47 }
 0x8b3   : > { %2534 = vmatmul.msk.f32.vlgmr.msra.gmra.mxu0 %vm940_vm2, %v1881_v49 }
 0x925   : > { %v1902_v51 = vpop.f32.mrf.mxu0 }
 0x926   : > { %2536 = vmatmul.msk.f32.vlgmr.msrb.gmra.mxu1 %vm940_vm2, %v1902_v51  ;;  %v2067_v51 = vld [vmem:[%s2886_s7 + $0x10] sm:$0xff] }
 0x927   : > { %2097 = vmatpush.msra.mxu3 %v2067_v51 }
 0x930   : > { %v1925_v52 = vpop.f32.mrf.mxu0 }
 0x931   : > { %2537 = vmatmul.msk.f32.gmra.mxu1 %vm940_vm2, %v1925_v52  ;;  %vm1976_vm2 = vweird.f32 %v2639_v62  ;;  %v2066_v52 = vld [vmem:[%s2886_s7 + $0x8] sm:$0xff] }
 0x932   : > { %2098 = vmatpush.msra.mxu3 %v2066_v52 }
 0x9a3   : > { %v1953_v53 = vpop.f32.mrf.mxu1 }
 0x9a4   : > { %v1959_v30 = vadd.f32 %v1953_v53, %v3081_v58  ;;  %v1975_v58 = vadd.f32 %v2639_v62, %v1974_v1  ;;  %v2065_v53 = vld [vmem:[%s2886_s7] sm:$0xff] }
 0x9a5   : > { %2099 = vmatpush.msra.mxu3 %v2065_v53 }
 0x9a6   : > { %v1961_v54 = vadd.f32 %v1959_v30, %v2914_v9  ;;  %v3110_v9 = vsel %vm1976_vm2, %v2639_v62, %v1975_v58  ;;  %v2602_v30 = vld [vmem:[%s3245_s25] ss:$0 sm:$0xff] }
 0x9a8   : > { %v1965_v55 = vsel %vm848_vm1, %v1961_v54, 0.0 }
 0x9a9   : > { %1966 = vadd.xlane.f32.xlu1 %v1965_v55 }
 0x9ae   : > { %v1956_v56 = vpop.f32.mrf.mxu1 }
 0x9af   : > { %v1960_v31 = vadd.f32 %v1956_v56, %v3084_v60 }
 0x9b1   : > { %v1962_v57 = vadd.f32 %v1960_v31, %v2921_v11 }
 0x9b3   : > { %v1968_v59 = vsel %vm848_vm1, %v1962_v57, 0.0 }
 0x9b4   : > { %1969 = vadd.xlane.f32.xlu2 %v1968_v59 }
 0xa1c   : > { %v1967_v2 = vpop.xlane.xlu1 %1966 }
 0xa1d   : > { %v1978_v60 = vmul.f32 %v3110_v9, %v1967_v2 }
 0xa1f   : > { %v1980_v11 = vsub.f32 %v1961_v54, %v1978_v60 }
 0xa21   : > { %v1982_v3 = vmul.f32 %v1980_v11, %v1980_v11 }
 0xa23   : > { %v1984_v4 = vsel %vm848_vm1, %v1982_v3, 0.0 }
 0xa24   : > { %1985 = vadd.xlane.f32.xlu0 %v1984_v4 }
 0xa27   : > { %v1970_v45 = vpop.xlane.xlu2 %1969 }
 0xa28   : > { %v1979_v5 = vmul.f32 %v3110_v9, %v1970_v45 }
 0xa2a   : > { %v1981_v48 = vsub.f32 %v1962_v57, %v1979_v5 }
 0xa2c   : > { %v1983_v6 = vmul.f32 %v1981_v48, %v1981_v48 }
 0xa2e   : > { %v1987_v7 = vsel %vm848_vm1, %v1983_v6, 0.0 }
 0xa2f   : > { %1988 = vadd.xlane.f32.xlu1 %v1987_v7 }
 0xa97   : > { %v1986_v14 = vpop.xlane.xlu0 %1985 }
 0xa98   : > { %v1990_v15 = vmul.f32 %v1986_v14, %v3110_v9 }
 0xa9a   : > { %v1992_v16 = vadd.f32 1e-05, %v1990_v15 }
 0xa9c   : > { %2640 = vrsqrt.f32 %v1992_v16  ;;  %vm2000_vm8 = vweird.f32 %v1992_v16 }
 0xaa2   : > { %v2641_v20 = vpop.eup %2640  ;;  %v1989_v21 = vpop.xlane.xlu1 %1988 }
 0xaa3   : > { %v1995_v22 = vmul.f32 %v2641_v20, %v1992_v16  ;;  %v1991_v23 = vmul.f32 %v1989_v21, %v3110_v9  ;;  %vm2001_vm7 = vweird.f32 %v2641_v20 }
 0xaa4   : > { %vm2002_vm9 = vmor %vm2000_vm8, %vm2001_vm7 }
 0xaa5   : > { %v1996_v25 = vmul.f32 %v2641_v20, %v1995_v22  ;;  %v1993_v26 = vadd.f32 1e-05, %v1991_v23 }
 0xaa7   : > { %v1997_v28 = vmul.f32 0.5, %v1996_v25  ;;  %2642 = vrsqrt.f32 %v1993_v26  ;;  %vm2010_vm11 = vweird.f32 %v1993_v26  ;;  %v2604_v25 = vld [vmem:[%s819_s30] ss:$0 sm:$0xff] }
 0xaa9   : > { %v1998_v29 = vsub.f32 1.5, %v1997_v28 }
 0xaab   : > { %v1999_v32 = vmul.f32 %v2641_v20, %v1998_v29 }
 0xaad   : > { %v2643_v34 = vpop.eup %2642  ;;  %v2003_v35 = vsel %vm2002_vm9, %v2641_v20, %v1999_v32 }
 0xaae   : > { %v2014_v36 = vmul.f32 %v2003_v35, %v1980_v11  ;;  %v2005_v37 = vmul.f32 %v2643_v34, %v1993_v26  ;;  %vm2011_vm10 = vweird.f32 %v2643_v34 }
 0xaaf   : > { %vm2012_vm12 = vmor %vm2010_vm11, %vm2011_vm10 }
 0xab0   : > { %v2019_v39 = vmul.f32 %v2600_v33, %v2014_v36  ;;  %v2006_v40 = vmul.f32 %v2643_v34, %v2005_v37 }
 0xab2   : > { %v2007_v41 = vmul.f32 0.5, %v2006_v40  ;;  %v2024_v42 = vadd.f32 %v2601_v38, %v2019_v39 }
 0xab4   : > { %v2008_v43 = vsub.f32 1.5, %v2007_v41  ;;  %2538 = vmatmul.msk.f32.vlgmr.msrb.gmra.mxu2 %vm848_vm1, %v2024_v42 }
 0xab6   : > { %v2009_v44 = vmul.f32 %v2643_v34, %v2008_v43 }
 0xab8   : > { %v2013_v46 = vsel %vm2012_vm12, %v2643_v34, %v2009_v44 }
 0xab9   : > { %v2015_v47 = vmul.f32 %v2013_v46, %v1981_v48 }
 0xabb   : > { %v2020_v49 = vmul.f32 %v2600_v33, %v2015_v47 }
 0xabd   : > { %v2025_v50 = vadd.f32 %v2601_v38, %v2020_v49 }
 0xabf   : > { %2539 = vmatmul.msk.f32.gmra.mxu2 %vm848_vm1, %v2025_v50 }
 0xb37   : > { %v2057_v54 = vpop.f32.mrf.mxu2 }
 0xb38   : > { %v2058_v55 = vadd.f32 %v2602_v30, %v2057_v54 }
 0xb3a   : > { %v2063_v56 = vmax.f32 %v2058_v55, 0.0 }
 0xb3c   : > { %2540 = vmatmul.msk.f32.vlgmr.msra.gmra.mxu3 %vm2077_vm13, %v2063_v56 }
 0xb42   : > { %v2060_v31 = vpop.f32.mrf.mxu2 }
 0xb43   : > { %v2061_v57 = vadd.f32 %v2602_v30, %v2060_v31 }
 0xb45   : > { %v2064_v59 = vmax.f32 %v2061_v57, 0.0 }
 0xb47   : > { %2541 = vmatmul.msk.f32.gmra.mxu3 %vm2077_vm13, %v2064_v59 }
 0xbbf   : > { %v2101_v62 = vpop.f32.mrf.mxu3 }
 0xbc0   : > { %v2102_v63 = vadd.f32 %v2603_v61, %v2101_v62 }
 0xbc2   : > { %v2107_v0 = vadd.f32 %v2102_v63, %v2024_v42 }
 0xbc4   : > { %v2111_v1 = vsel %vm848_vm1, %v2107_v0, 0.0 }
 0xbc5   : > { %2112 = vadd.xlane.f32.xlu2 %v2111_v1 }
 0xbca   : > { %v2104_v58 = vpop.f32.mrf.mxu3 }
 0xbcb   : > { %v2105_v2 = vadd.f32 %v2603_v61, %v2104_v58 }
 0xbcd   : > { %v2108_v60 = vadd.f32 %v2105_v2, %v2025_v50 }
 0xbcf   : > { %v2114_v11 = vsel %vm848_vm1, %v2108_v60, 0.0 }
 0xbd0   : > { %2115 = vadd.xlane.f32.xlu0 %v2114_v11 }
 0xc38   : > { %v2113_v3 = vpop.xlane.xlu2 %2112 }
 0xc39   : > { %v2117_v4 = vmul.f32 %v2113_v3, %v3110_v9 }
 0xc3b   : > { %v2119_v45 = vsub.f32 %v2107_v0, %v2117_v4 }
 0xc3d   : > { %v2121_v5 = vmul.f32 %v2119_v45, %v2119_v45 }
 0xc3f   : > { %v2123_v48 = vsel %vm848_vm1, %v2121_v5, 0.0 }
 0xc40   : > { %2124 = vadd.xlane.f32.xlu1 %v2123_v48 }
 0xc43   : > { %v2116_v6 = vpop.xlane.xlu0 %2115 }
 0xc44   : > { %v2118_v7 = vmul.f32 %v2116_v6, %v3110_v9 }
 0xc46   : > { %v2120_v8 = vsub.f32 %v2108_v60, %v2118_v7 }
 0xc48   : > { %v2122_v10 = vmul.f32 %v2120_v8, %v2120_v8 }
 0xc4a   : > { %v2126_v12 = vsel %vm848_vm1, %v2122_v10, 0.0 }
 0xc4b   : > { %2127 = vadd.xlane.f32.xlu2 %v2126_v12 }
 0xcb3   : > { %v2125_v13 = vpop.xlane.xlu1 %2124 }
 0xcb4   : > { %v2129_v14 = vmul.f32 %v2125_v13, %v3110_v9 }
 0xcb6   : > { %v2131_v15 = vadd.f32 1e-05, %v2129_v14 }
 0xcb8   : > { %2644 = vrsqrt.f32 %v2131_v15  ;;  %vm2139_vm15 = vweird.f32 %v2131_v15 }
 0xcbe   : > { %v2645_v16 = vpop.eup %2644  ;;  %v2128_v17 = vpop.xlane.xlu2 %2127 }
 0xcbf   : > { %v2134_v18 = vmul.f32 %v2645_v16, %v2131_v15  ;;  %v2130_v19 = vmul.f32 %v2128_v17, %v3110_v9  ;;  %vm2140_vm14 = vweird.f32 %v2645_v16  ;;  %v2605_v9 = vld [vmem:[%s822_s0] ss:$0 sm:$0xff] }
 0xcc0   : > { %vm2141_vm0 = vmor %vm2139_vm15, %vm2140_vm14 }
 0xcc1   : > { %v2135_v20 = vmul.f32 %v2645_v16, %v2134_v18  ;;  %v2132_v21 = vadd.f32 1e-05, %v2130_v19 }
 0xcc3   : > { %v2136_v22 = vmul.f32 0.5, %v2135_v20  ;;  %2646 = vrsqrt.f32 %v2132_v21  ;;  %vm2149_vm4 = vweird.f32 %v2132_v21 }
 0xcc5   : > { %v2137_v23 = vsub.f32 1.5, %v2136_v22 }
 0xcc7   : > { %v2138_v24 = vmul.f32 %v2645_v16, %v2137_v23 }
 0xcc9   : > { %v2647_v26 = vpop.eup %2646  ;;  %v2142_v27 = vsel %vm2141_vm0, %v2645_v16, %v2138_v24 }
 0xcca   : > { %v2153_v28 = vmul.f32 %v2142_v27, %v2119_v45  ;;  %v2144_v29 = vmul.f32 %v2647_v26, %v2132_v21  ;;  %vm2150_vm3 = vweird.f32 %v2647_v26 }
 0xccb   : > { %vm2151_vm5 = vmor %vm2149_vm4, %vm2150_vm3 }
 0xccc   : > { %v2158_v32 = vmul.f32 %v2604_v25, %v2153_v28  ;;  %v2145_v33 = vmul.f32 %v2647_v26, %v2144_v29 }
 0xcce   : > { %v2163_v34 = vadd.f32 %v2605_v9, %v2158_v32  ;;  %v2146_v35 = vmul.f32 0.5, %v2145_v33 }
 0xcd0   : > { %2165 = vst.msk [vmem:[#allocation2] sm:$0xff] %vm848_vm1, %v2163_v34  ;;  %v2147_v36 = vsub.f32 1.5, %v2146_v35 }
 0xcd2   : > { %v2148_v37 = vmul.f32 %v2647_v26, %v2147_v36 }
 0xcd4   : > { %v2152_v38 = vsel %vm2151_vm5, %v2647_v26, %v2148_v37 }
 0xcd5   : > { %v2154_v39 = vmul.f32 %v2152_v38, %v2120_v8 }
 0xcd7   : > { %v2159_v40 = vmul.f32 %v2604_v25, %v2154_v39  ;;  %2170 = sbr.rel (%p2542_p6) target bundleno = 3300 (0xce4), region = 96 }
 0xcd9   : > { %v2164_v41 = vadd.f32 %v2605_v9, %v2159_v40 }
 0xcdb   : > { %2166 = vst.msk [vmem:[#allocation2 + $0x8] sm:$0xff] %vm848_vm1, %v2164_v41 }
 0xcdc   : > { %v2171_v42 = vld [vmem:[#allocation2] sm:$0xff] }
 0xcdd   : > { %2173 = vst.msk [vmem:[#allocation3] sm:$0xff] %vm848_vm1, %v2171_v42 }
 0xce2   : > { %v2172_v43 = vld [vmem:[#allocation2 + $0x8] sm:$0xff] }
 0xce3   : > { %2174 = vst.msk [vmem:[#allocation3 + $0x8] sm:$0xff] %vm848_vm1, %v2172_v43 }
 0xce4 PF: > { %s3247_s0 = sld [smem:[#allocation8_spill]]  ;;  %s2705_s5 = smov [#allocation3]  }
 0xce5   : > { %s3249_s23 = sld [smem:[#allocation21_spill]]  ;;  %s2183_s24 = sshll.u32 %s2705_s5, 4  ;;  %s2184_s24 = int_to_ptr.vmem [resolvable:$true] %s2183_s24 }
 0xce6   : > { %s2706_s1 = smov 128   ;;  %s2707_s17 = smov 8  }
 0xcea   : > { %s3248_s30 = sadd.s32 4294967295, %s3247_s0  }
 0xceb   : > { %p2557_p7 = scmp.eq.s32.totalorder %s3248_s30, 1  ;;  %s2185_s2 = sshll.u32 %s3249_s23, 4  ;;  %s2186_s2 = int_to_ptr.hbm [resolvable:$true] %s2185_s2 }
 0xced   : > { %2554 = dma.vmem_to_hbm [thread:$0]  (%p2557_p7), %s2184_s24, 256, %s2186_s2, [#allocation4], %s2706_s1, %s2706_s1, %s2707_s17  }
 0xcee   : > { %2689 = dma.done.wait (%p2557_p7), [#allocation4], 256  }
 0xcef   : > { %2691 = vsyncadd (%p2557_p7), [#allocation4], 4294967040 }
 0xcf0 PF: > { %s3250_s22 = sld [smem:[#allocation8_spill]] }
 0xcf1   : > { %s3251_s24 = sld [smem:[#allocation7_spill]] }
 0xcf2   : > { %s3252_s25 = sld [smem:[#allocation9_spill]] }
 0xcf6   : > { %s28_s26 = sadd.s32 1, %s3250_s22  }
 0xcf7   : > { %p25_p8 = scmp.ge.s32.totalorder %s28_s26, 4  }
 0xcf9   :  { %27 = sbr.rel (!%p25_p8) target bundleno = 12 (0xc), region = 193 }
 0xcfe   :  { %2202 = vsyncpa [#allocation4], 1 }
 0xcff   :  { %2204 = vsyncpa [#allocation4 + $0x1], 1 }

</bundles_post_ra>
